<compile_context>
chip_gen: v6e
topology: v6e:2x2x1
jax: 0.10.0
libtpu: 0.0.40
codegen_flags: <defaults>
</compile_context>

<pallas_src>
import functools

import jax
import jax.numpy as jnp
from jax import lax
from jax.experimental import pallas as pl
from jax.experimental.pallas import tpu as pltpu


# ------------------------------ small helpers --------------------------------
def _round_up(n, m):
    return ((n + m - 1) // m) * m


def _vmem_limit_bytes():
    """Generation-aware VMEM limit (75% of physical, clamped)."""
    cap = 64 * 1024 * 1024
    try:
        info = pltpu.get_tpu_info()
        cap = int(getattr(info, "vmem_capacity_bytes", cap))
    except Exception:
        pass
    return max(16 * 1024 * 1024, min((cap // 4) * 3, 100 * 1024 * 1024))


def _pick_tile(n, cap, align=8):
    """Largest aligned divisor of n that is <= cap; otherwise pad n up.

    Returns (tile, padded_n) with tile % align == 0 (or tile == n when
    align == 1) and padded_n % tile == 0.  Never silently returns a single
    huge block larger than `cap`.
    """
    cap = max(align, min(cap, _round_up(n, align)))
    cap -= cap % align
    t = min(cap, (n // align) * align)
    while t >= align:
        if n % t == 0:
            return t, n
        t -= align
    tile = cap
    return tile, _round_up(n, tile)


def _sigmoid(x):
    return 1.0 / (1.0 + jnp.exp(-x))


# ------------- kernel A: Conv1d + PReLU + layer-0 gate projection ------------
def conv_prelu_proj_kernel(x_ref, cw_ref, cb_ref, a_ref, wih_ref, b0_ref, z_ref):
    # x_ref : (tn, K*C) bf16  K dilation-shifted taps, concatenated on channels
    # cw_ref: (K*C, C) bf16   conv weights (taps stacked on the contraction axis)
    # cb/a  : (1, C)  f32     conv bias / per-channel PReLU alpha
    # wih   : (C, 4C) bf16    layer-0 W_ih, gates [i|f|g|o] on the lane axis
    # b0    : (1, 4C) f32     layer-0 b_ih + b_hh
    # z_ref : (tn, 4C) bf16   layer-0 gate pre-activations (input part + bias)
    y = jnp.dot(x_ref[...], cw_ref[...], preferred_element_type=jnp.float32)
    y = y + cb_ref[...]
    y = jnp.where(y > 0.0, y, a_ref[...] * y)              # PReLU, f32
    z = jnp.dot(y.astype(jnp.bfloat16), wih_ref[...],
                preferred_element_type=jnp.float32) + b0_ref[...]
    z_ref[...] = z.astype(z_ref.dtype)


# ----------- generic projection (layer-1 W_ih / final Linear), gridded -------
def proj_kernel(x_ref, w_ref, b_ref, o_ref):
    # x_ref: (tn, C) bf16   w_ref: (C, G) bf16   b_ref: (1, G) f32
    o_ref[...] = (jnp.dot(x_ref[...], w_ref[...],
                          preferred_element_type=jnp.float32)
                  + b_ref[...]).astype(o_ref.dtype)


# --------------- LSTM layer recurrence (time-chunked, streamed) --------------
def lstm_layer_kernel(z_ref, whh_ref, h_ref, h_c, c_c, *, unroll, hidden):
    # z_ref : (tl, Bb, 4C) bf16  gate pre-activations (input part + biases)
    # whh   : (C, 4C)      bf16  recurrent weights, gates [i|f|g|o] on lanes
    # h_ref : (tl, Bb, C)  bf16  hidden output for this time chunk
    # h_c/c_c: (Bb, C) f32 carry scratch, persistent across time-chunk steps
    @pl.when(pl.program_id(1) == 0)           # new batch block -> reset carries
    def _():
        h_c[...] = jnp.zeros_like(h_c)
        c_c[...] = jnp.zeros_like(c_c)

    tl = z_ref.shape[0]
    whh = whh_ref[...]                        # hoisted; bf16 matmul operand

    def one_step(t, h, c):
        # one fused (Bb, C) x (C, 4C) recurrent matmul per step
        pre = z_ref[t].astype(jnp.float32) + jnp.dot(
            h.astype(jnp.bfloat16), whh, preferred_element_type=jnp.float32)
        i_t = _sigmoid(pre[:, :hidden])
        f_t = _sigmoid(pre[:, hidden:2 * hidden])
        g_t = jnp.tanh(pre[:, 2 * hidden:3 * hidden])
        o_t = _sigmoid(pre[:, 3 * hidden:])
        c_new = f_t * c + i_t * g_t
        h_new = o_t * jnp.tanh(c_new)
        h_ref[t] = h_new.astype(h_ref.dtype)  # per-step store; fine for C>=128
        return h_new, c_new

    def body(s, carry):                       # manual unroll (LLO visibility)
        h, c = carry
        for u in range(unroll):
            h, c = one_step(s * unroll + u, h, c)
        return (h, c)

    h_fin, c_fin = lax.fori_loop(0, tl // unroll, body, (h_c[...], c_c[...]))
    h_c[...] = h_fin
    c_c[...] = c_fin


# --------------------------------- launchers ---------------------------------
def _run_conv_prelu_proj(x_cat, conv_w, conv_b, alpha, wih0, b0,
                         *, row_chunk, vmem_limit):
    N, KC = x_cat.shape
    C = conv_b.shape[1]
    G = wih0.shape[1]
    per_row = 2 * (KC * 2) + 2 * (G * 2) + C * 4 + G * 4   # db'd in/out + temps
    cap = max(8, min(row_chunk, max(8, (vmem_limit // 3) // per_row)))
    tn, n_pad = _pick_tile(N, cap, align=8)
    if n_pad != N:
        x_cat = jnp.pad(x_cat, ((0, n_pad - N), (0, 0)))
    z = pl.pallas_call(
        conv_prelu_proj_kernel,
        out_shape=jax.ShapeDtypeStruct((n_pad, G), jnp.bfloat16),
        grid=(n_pad // tn,),
        in_specs=[
            pl.BlockSpec((tn, KC), lambda i: (i, 0)),
            pl.BlockSpec((KC, C), lambda i: (0, 0)),
            pl.BlockSpec((1, C), lambda i: (0, 0)),
            pl.BlockSpec((1, C), lambda i: (0, 0)),
            pl.BlockSpec((C, G), lambda i: (0, 0)),
            pl.BlockSpec((1, G), lambda i: (0, 0)),
        ],
        out_specs=pl.BlockSpec((tn, G), lambda i: (i, 0)),
        compiler_params=pltpu.CompilerParams(
            dimension_semantics=("parallel",),
            vmem_limit_bytes=vmem_limit),
    )(x_cat, conv_w, conv_b, alpha, wih0, b0)
    return z[:N] if n_pad != N else z


def _run_proj(x2d, w, b, out_dtype, *, row_chunk, vmem_limit):
    N, C = x2d.shape
    G = w.shape[1]
    per_row = 2 * (C * 2) + 2 * (G * jnp.dtype(out_dtype).itemsize) + G * 4
    cap = max(8, min(row_chunk, max(8, (vmem_limit // 3) // per_row)))
    tn, n_pad = _pick_tile(N, cap, align=8)
    if n_pad != N:
        x2d = jnp.pad(x2d, ((0, n_pad - N), (0, 0)))
    out = pl.pallas_call(
        proj_kernel,
        out_shape=jax.ShapeDtypeStruct((n_pad, G), out_dtype),
        grid=(n_pad // tn,),
        in_specs=[
            pl.BlockSpec((tn, C), lambda i: (i, 0)),
            pl.BlockSpec((C, G), lambda i: (0, 0)),
            pl.BlockSpec((1, G), lambda i: (0, 0)),
        ],
        out_specs=pl.BlockSpec((tn, G), lambda i: (i, 0)),
        compiler_params=pltpu.CompilerParams(
            dimension_semantics=("parallel",),
            vmem_limit_bytes=vmem_limit),
    )(x2d, w, b)
    return out[:N] if n_pad != N else out


def _run_lstm_layer(z_lbg, whh, *, hidden, time_chunk, batch_blocks, vmem_limit):
    L, B, G = z_lbg.shape
    C = hidden
    Bb = B
    # Batch-parallel axis (v7x: two TensorCores).  Block must keep the
    # second-to-last dim either == B or a multiple of 8.
    if batch_blocks > 1 and B % batch_blocks == 0 and (B // batch_blocks) % 8 == 0:
        Bb = B // batch_blocks
    nb = B // Bb
    per_t = 2 * (Bb * G * 2) + 2 * (Bb * C * 2)            # db'd z + h blocks
    cap = max(1, min(time_chunk, max(1, (vmem_limit // 3) // per_t)))
    tl, l_pad = _pick_tile(L, cap, align=1)
    if l_pad != L:
        z_lbg = jnp.pad(z_lbg, ((0, l_pad - L), (0, 0), (0, 0)))
    unroll = 4 if tl % 4 == 0 else (2 if tl % 2 == 0 else 1)
    h = pl.pallas_call(
        functools.partial(lstm_layer_kernel, unroll=unroll, hidden=C),
        out_shape=jax.ShapeDtypeStruct((l_pad, B, C), jnp.bfloat16),
        grid=(nb, l_pad // tl),
        in_specs=[
            pl.BlockSpec((tl, Bb, G), lambda b, t: (t, b, 0)),
            pl.BlockSpec((C, G), lambda b, t: (0, 0)),
        ],
        out_specs=pl.BlockSpec((tl, Bb, C), lambda b, t: (t, b, 0)),
        scratch_shapes=[pltpu.VMEM((Bb, C), jnp.float32),
                        pltpu.VMEM((Bb, C), jnp.float32)],
        compiler_params=pltpu.CompilerParams(
            dimension_semantics=("parallel", "arbitrary"),
            vmem_limit_bytes=vmem_limit),
    )(z_lbg, whh)
    return h[:L] if l_pad != L else h


# --------------------------------- wrapper ------------------------------------
def ricbe_bottleneck_forward(x_ncw, params, *, dilation, time_chunk=512,
                             row_chunk=1024, batch_blocks=1):
    """RicbeBottleneck forward (LSTM branch).  x_ncw: (B, C, L) -> (B, C, L).

    batch_blocks: set to 2 on v7x (2 TensorCores/chip) to shard the serial
    recurrence; keep 1 on v5e/v6e (single TensorCore).
    """
    B, C, L = x_ncw.shape
    K = 3
    pad = (K - 1) // 2 * dilation
    N = L * B
    f32, bf16 = jnp.float32, jnp.bfloat16
    vmem_limit = _vmem_limit_bytes()

    # ---- time-major rows; later reshapes are free (row-major) ----
    x_lbc = jnp.transpose(x_ncw, (2, 0, 1)).astype(f32)              # (L, B, C)
    x_rows = jnp.pad(x_lbc, ((pad, pad), (0, 0), (0, 0))).reshape(
        (L + 2 * pad) * B, C)                                        # (Lp*B, C)
    # K dilation-shifted tap views, channel-concatenated -> one conv matmul.
    x_cat = jnp.concatenate(
        [lax.slice_in_dim(x_rows, k * dilation * B, k * dilation * B + N, axis=0)
         for k in range(K)], axis=1).astype(bf16)                    # (N, K*C)

    # ---- parameter prep (bf16 matmul operands, f32 biases, gates on lanes) ----
    conv_w = jnp.transpose(params["conv_w"], (2, 1, 0)).reshape(K * C, C).astype(bf16)
    conv_b = params["conv_b"].reshape(1, C).astype(f32)
    alpha = params["prelu_a"].reshape(1, C).astype(f32)

    wih0 = params["w_ih_l0"].T.astype(bf16)                          # (C, 4C)
    whh0 = params["w_hh_l0"].T.astype(bf16)
    wih1 = params["w_ih_l1"].T.astype(bf16)
    whh1 = params["w_hh_l1"].T.astype(bf16)
    b0 = (params["b_ih_l0"] + params["b_hh_l0"]).reshape(1, 4 * C).astype(f32)
    b1 = (params["b_ih_l1"] + params["b_hh_l1"]).reshape(1, 4 * C).astype(f32)
    lin_w = params["lin_w"].T.astype(bf16)                           # (C, C)
    lin_b = params["lin_b"].reshape(1, C).astype(f32)

    # ---- kernel A: conv + PReLU + layer-0 gate projection (gridded) ----
    z0 = _run_conv_prelu_proj(x_cat, conv_w, conv_b, alpha, wih0, b0,
                              row_chunk=row_chunk, vmem_limit=vmem_limit)   # (N,4C) bf16

    # ---- layer-0 recurrence (streamed over time chunks) ----
    h0 = _run_lstm_layer(z0.reshape(L, B, 4 * C), whh0, hidden=C,
                         time_chunk=time_chunk, batch_blocks=batch_blocks,
                         vmem_limit=vmem_limit)                              # (L,B,C) bf16

    # ---- layer-1 input projection: one lane-dense (N,C)x(C,4C) matmul ----
    z1 = _run_proj(h0.reshape(N, C), wih1, b1, bf16,
                   row_chunk=row_chunk, vmem_limit=vmem_limit)               # (N,4C) bf16

    # ---- layer-1 recurrence ----
    h1 = _run_lstm_layer(z1.reshape(L, B, 4 * C), whh1, hidden=C,
                         time_chunk=time_chunk, batch_blocks=batch_blocks,
                         vmem_limit=vmem_limit)                              # (L,B,C) bf16

    # ---- final Linear ----
    y = _run_proj(h1.reshape(N, C), lin_w, lin_b, f32,
                  row_chunk=row_chunk, vmem_limit=vmem_limit)                # (N,C) f32
    return jnp.transpose(y.reshape(L, B, C), (1, 2, 0))                      # (B,C,L)


# ------------------------- pure-JAX reference (f32) ---------------------------
def ricbe_bottleneck_reference(x, params, *, dilation):
    B, C, L = x.shape
    K = 3
    pad = (K - 1) // 2 * dilation
    xp = jnp.pad(x, ((0, 0), (0, 0), (pad, pad)))
    y = jnp.zeros((B, C, L), jnp.float32)
    for k in range(K):
        xk = lax.slice_in_dim(xp, k * dilation, k * dilation + L, axis=2)
        y = y + jnp.einsum("oi,bit->bot", params["conv_w"][:, :, k], xk)
    y = y + params["conv_b"][None, :, None]
    a = params["prelu_a"][None, :, None]
    y = jnp.where(y > 0, y, a * y)
    h = jnp.transpose(y, (0, 2, 1))                                  # (B, L, C)

    def lstm_layer(x_blc, w_ih, w_hh, b_ih, b_hh):
        Bc, _, Cc = x_blc.shape

        def step(carry, xt):
            hh, cc = carry
            gates = xt @ w_ih.T + hh @ w_hh.T + b_ih + b_hh
            i = jax.nn.sigmoid(gates[:, :Cc])
            f = jax.nn.sigmoid(gates[:, Cc:2 * Cc])
            g = jnp.tanh(gates[:, 2 * Cc:3 * Cc])
            o = jax.nn.sigmoid(gates[:, 3 * Cc:])
            cc = f * cc + i * g
            hh = o * jnp.tanh(cc)
            return (hh, cc), hh

        init = (jnp.zeros((Bc, Cc), jnp.float32), jnp.zeros((Bc, Cc), jnp.float32))
        _, hs = lax.scan(step, init, jnp.transpose(x_blc, (1, 0, 2)))
        return jnp.transpose(hs, (1, 0, 2))

    h = lstm_layer(h, params["w_ih_l0"], params["w_hh_l0"],
                   params["b_ih_l0"], params["b_hh_l0"])
    h = lstm_layer(h, params["w_ih_l1"], params["w_hh_l1"],
                   params["b_ih_l1"], params["b_hh_l1"])
    out = h @ params["lin_w"].T + params["lin_b"]
    return jnp.transpose(out, (0, 2, 1))


# ------------------------ deterministic parameter init ------------------------
def init_params(key, C, K=3):
    ks = jax.random.split(key, 12)

    def u(k, shape, fan_in):
        bound = 1.0 / float(fan_in) ** 0.5
        return jax.random.uniform(k, shape, jnp.float32, -bound, bound)

    return {
        "conv_w": u(ks[0], (C, C, K), C * K),     # torch Conv1d (C_out, C_in, K)
        "conv_b": u(ks[1], (C,), C * K),
        "prelu_a": jnp.full((C,), 0.25, jnp.float32),
        "w_ih_l0": u(ks[2], (4 * C, C), C),
        "w_hh_l0": u(ks[3], (4 * C, C), C),
        "b_ih_l0": u(ks[4], (4 * C,), C),
        "b_hh_l0": u(ks[5], (4 * C,), C),
        "w_ih_l1": u(ks[6], (4 * C, C), C),
        "w_hh_l1": u(ks[7], (4 * C, C), C),
        "b_ih_l1": u(ks[8], (4 * C,), C),
        "b_hh_l1": u(ks[9], (4 * C,), C),
        "lin_w": u(ks[10], (C, C), C),
        "lin_b": u(ks[11], (C,), C),
    }


if __name__ == "__main__":
    B, C, L = 8, 32, 16
    dilation = 2
    key = jax.random.PRNGKey(0)
    kx, kp = jax.random.split(key)
    x = jax.random.normal(kx, (B, C, L), jnp.float32)
    params = init_params(kp, C)

    fwd = jax.jit(functools.partial(ricbe_bottleneck_forward, dilation=dilation))
    y = fwd(x, params)
    jax.block_until_ready(y)
    assert y.shape == (B, C, L)
    assert bool(jnp.all(jnp.isfinite(y)))

    y_ref = jax.jit(functools.partial(ricbe_bottleneck_reference,
                                      dilation=dilation))(x, params)
    max_err = float(jnp.max(jnp.abs(y - y_ref)))
    assert max_err < 0.2, f"max abs error vs f32 reference: {max_err}"  # bf16 matmuls
    print("KERNEL_OK")
</pallas_src>

<mosaic_0001>
module attributes {stable_mosaic.version = 11 : i64} {
  func.func @proj_kernel(%arg0: i32, %arg1: memref<128x32xbf16, #tpu.memory_space<vmem>>, %arg2: memref<32x128xbf16, #tpu.memory_space<vmem>>, %arg3: memref<1x128xf32, #tpu.memory_space<vmem>>, %arg4: memref<128x128xbf16, #tpu.memory_space<vmem>>) attributes {dimension_semantics = [#tpu.dimension_semantics<parallel>], iteration_bounds = array<i64: 1>, scalar_prefetch = 0 : i64, scratch_operands = 0 : i64, tpu.core_type = #tpu.core_type<tc>, window_params = [{transform_indices = @transform_0, window_bounds = array<i64: 128, 32>}, {pipeline_mode = #tpu.pipeline_mode<synchronous>, transform_indices = @transform_1, window_bounds = array<i64: 32, 128>}, {pipeline_mode = #tpu.pipeline_mode<synchronous>, transform_indices = @transform_2, window_bounds = array<i64: 1, 128>}, {transform_indices = @transform_3, window_bounds = array<i64: 128, 128>}]} {
    %c0 = arith.constant 0 : index
    %c0_0 = arith.constant 0 : index
    %0 = vector.load %arg1[%c0, %c0_0] : memref<128x32xbf16, #tpu.memory_space<vmem>>, vector<128x32xbf16>
    %c0_1 = arith.constant 0 : index
    %c0_2 = arith.constant 0 : index
    %1 = vector.load %arg2[%c0_1, %c0_2] : memref<32x128xbf16, #tpu.memory_space<vmem>>, vector<32x128xbf16>
    %cst = arith.constant dense<0.000000e+00> : vector<128x128xf32>
    %2 = tpu.matmul %0, %1, %cst {dimension_numbers = #tpu.dot_dimension_numbers<[1], [0], [0], [1], [0, 0, 1, 1], [], []>} : vector<128x32xbf16>, vector<32x128xbf16>, vector<128x128xf32> -> vector<128x128xf32>
    %c0_3 = arith.constant 0 : index
    %c0_4 = arith.constant 0 : index
    %3 = vector.load %arg3[%c0_3, %c0_4] : memref<1x128xf32, #tpu.memory_space<vmem>>, vector<1x128xf32>
    %4 = vector.broadcast %3 : vector<1x128xf32> to vector<128x128xf32>
    %5 = arith.addf %2, %4 : vector<128x128xf32>
    %6 = arith.truncf %5 : vector<128x128xf32> to vector<128x128xbf16>
    %c0_5 = arith.constant 0 : index
    %c0_6 = arith.constant 0 : index
    %7 = vector.load %arg4[%c0_5, %c0_6] : memref<128x128xbf16, #tpu.memory_space<vmem>>, vector<128x128xbf16>
    tpu.vector_store %arg4[%c0_5, %c0_6], %6 {strides = array<i32>} : memref<128x128xbf16, #tpu.memory_space<vmem>>, vector<128x128xbf16>,
    return
  }
  func.func @transform_0(%arg0: i32) -> (i32, i32) {
    %c0_i32 = arith.constant 0 : i32
    %c0_i32_0 = arith.constant 0 : i32
    return %arg0, %c0_i32 : i32, i32
  }
  func.func @transform_1(%arg0: i32) -> (i32, i32) {
    %c0_i32 = arith.constant 0 : i32
    %c0_i32_0 = arith.constant 0 : i32
    %c0_i32_1 = arith.constant 0 : i32
    return %c0_i32, %c0_i32_0 : i32, i32
  }
  func.func @transform_2(%arg0: i32) -> (i32, i32) {
    %c0_i32 = arith.constant 0 : i32
    %c0_i32_0 = arith.constant 0 : i32
    %c0_i32_1 = arith.constant 0 : i32
    return %c0_i32, %c0_i32_0 : i32, i32
  }
  func.func @transform_3(%arg0: i32) -> (i32, i32) {
    %c0_i32 = arith.constant 0 : i32
    %c0_i32_0 = arith.constant 0 : i32
    return %arg0, %c0_i32 : i32, i32
  }
}

module attributes {stable_mosaic.version = 11 : i64} {
  func.func @conv_prelu_proj_kernel(%arg0: i32, %arg1: memref<128x96xbf16, #tpu.memory_space<vmem>>, %arg2: memref<96x32xbf16, #tpu.memory_space<vmem>>, %arg3: memref<1x32xf32, #tpu.memory_space<vmem>>, %arg4: memref<1x32xf32, #tpu.memory_space<vmem>>, %arg5: memref<32x128xbf16, #tpu.memory_space<vmem>>, %arg6: memref<1x128xf32, #tpu.memory_space<vmem>>, %arg7: memref<128x128xbf16, #tpu.memory_space<vmem>>) attributes {dimension_semantics = [#tpu.dimension_semantics<parallel>], iteration_bounds = array<i64: 1>, scalar_prefetch = 0 : i64, scratch_operands = 0 : i64, tpu.core_type = #tpu.core_type<tc>, window_params = [{transform_indices = @transform_0, window_bounds = array<i64: 128, 96>}, {pipeline_mode = #tpu.pipeline_mode<synchronous>, transform_indices = @transform_1, window_bounds = array<i64: 96, 32>}, {pipeline_mode = #tpu.pipeline_mode<synchronous>, transform_indices = @transform_2, window_bounds = array<i64: 1, 32>}, {pipeline_mode = #tpu.pipeline_mode<synchronous>, transform_indices = @transform_3, window_bounds = array<i64: 1, 32>}, {pipeline_mode = #tpu.pipeline_mode<synchronous>, transform_indices = @transform_4, window_bounds = array<i64: 32, 128>}, {pipeline_mode = #tpu.pipeline_mode<synchronous>, transform_indices = @transform_5, window_bounds = array<i64: 1, 128>}, {transform_indices = @transform_6, window_bounds = array<i64: 128, 128>}]} {
    %c0 = arith.constant 0 : index
    %c0_0 = arith.constant 0 : index
    %0 = vector.load %arg1[%c0, %c0_0] : memref<128x96xbf16, #tpu.memory_space<vmem>>, vector<128x96xbf16>
    %c0_1 = arith.constant 0 : index
    %c0_2 = arith.constant 0 : index
    %1 = vector.load %arg2[%c0_1, %c0_2] : memref<96x32xbf16, #tpu.memory_space<vmem>>, vector<96x32xbf16>
    %cst = arith.constant dense<0.000000e+00> : vector<128x32xf32>
    %2 = tpu.matmul %0, %1, %cst {dimension_numbers = #tpu.dot_dimension_numbers<[1], [0], [0], [1], [0, 0, 1, 1], [], []>} : vector<128x96xbf16>, vector<96x32xbf16>, vector<128x32xf32> -> vector<128x32xf32>
    %c0_3 = arith.constant 0 : index
    %c0_4 = arith.constant 0 : index
    %3 = vector.load %arg3[%c0_3, %c0_4] : memref<1x32xf32, #tpu.memory_space<vmem>>, vector<1x32xf32>
    %4 = vector.broadcast %3 : vector<1x32xf32> to vector<128x32xf32>
    %5 = arith.addf %2, %4 : vector<128x32xf32>
    %cst_5 = arith.constant 0.000000e+00 : f32
    %6 = vector.broadcast %cst_5 : f32 to vector<128x32xf32>
    %7 = arith.cmpf ogt, %5, %6 : vector<128x32xf32>
    %c0_6 = arith.constant 0 : index
    %c0_7 = arith.constant 0 : index
    %8 = vector.load %arg4[%c0_6, %c0_7] : memref<1x32xf32, #tpu.memory_space<vmem>>, vector<1x32xf32>
    %9 = vector.broadcast %8 : vector<1x32xf32> to vector<128x32xf32>
    %10 = arith.mulf %9, %5 : vector<128x32xf32>
    %11 = arith.select %7, %5, %10 : vector<128x32xi1>, vector<128x32xf32>
    %12 = arith.truncf %11 : vector<128x32xf32> to vector<128x32xbf16>
    %c0_8 = arith.constant 0 : index
    %c0_9 = arith.constant 0 : index
    %13 = vector.load %arg5[%c0_8, %c0_9] : memref<32x128xbf16, #tpu.memory_space<vmem>>, vector<32x128xbf16>
    %cst_10 = arith.constant dense<0.000000e+00> : vector<128x128xf32>
    %14 = tpu.matmul %12, %13, %cst_10 {dimension_numbers = #tpu.dot_dimension_numbers<[1], [0], [0], [1], [0, 0, 1, 1], [], []>} : vector<128x32xbf16>, vector<32x128xbf16>, vector<128x128xf32> -> vector<128x128xf32>
    %c0_11 = arith.constant 0 : index
    %c0_12 = arith.constant 0 : index
    %15 = vector.load %arg6[%c0_11, %c0_12] : memref<1x128xf32, #tpu.memory_space<vmem>>, vector<1x128xf32>
    %16 = vector.broadcast %15 : vector<1x128xf32> to vector<128x128xf32>
    %17 = arith.addf %14, %16 : vector<128x128xf32>
    %18 = arith.truncf %17 : vector<128x128xf32> to vector<128x128xbf16>
    %c0_13 = arith.constant 0 : index
    %c0_14 = arith.constant 0 : index
    %19 = vector.load %arg7[%c0_13, %c0_14] : memref<128x128xbf16, #tpu.memory_space<vmem>>, vector<128x128xbf16>
    tpu.vector_store %arg7[%c0_13, %c0_14], %18 {strides = array<i32>} : memref<128x128xbf16, #tpu.memory_space<vmem>>, vector<128x128xbf16>,
    return
  }
  func.func @transform_0(%arg0: i32) -> (i32, i32) {
    %c0_i32 = arith.constant 0 : i32
    %c0_i32_0 = arith.constant 0 : i32
    return %arg0, %c0_i32 : i32, i32
  }
  func.func @transform_1(%arg0: i32) -> (i32, i32) {
    %c0_i32 = arith.constant 0 : i32
    %c0_i32_0 = arith.constant 0 : i32
    %c0_i32_1 = arith.constant 0 : i32
    return %c0_i32, %c0_i32_0 : i32, i32
  }
  func.func @transform_2(%arg0: i32) -> (i32, i32) {
    %c0_i32 = arith.constant 0 : i32
    %c0_i32_0 = arith.constant 0 : i32
    %c0_i32_1 = arith.constant 0 : i32
    return %c0_i32, %c0_i32_0 : i32, i32
  }
  func.func @transform_3(%arg0: i32) -> (i32, i32) {
    %c0_i32 = arith.constant 0 : i32
    %c0_i32_0 = arith.constant 0 : i32
    %c0_i32_1 = arith.constant 0 : i32
    return %c0_i32, %c0_i32_0 : i32, i32
  }
  func.func @transform_4(%arg0: i32) -> (i32, i32) {
    %c0_i32 = arith.constant 0 : i32
    %c0_i32_0 = arith.constant 0 : i32
    %c0_i32_1 = arith.constant 0 : i32
    return %c0_i32, %c0_i32_0 : i32, i32
  }
  func.func @transform_5(%arg0: i32) -> (i32, i32) {
    %c0_i32 = arith.constant 0 : i32
    %c0_i32_0 = arith.constant 0 : i32
    %c0_i32_1 = arith.constant 0 : i32
    return %c0_i32, %c0_i32_0 : i32, i32
  }
  func.func @transform_6(%arg0: i32) -> (i32, i32) {
    %c0_i32 = arith.constant 0 : i32
    %c0_i32_0 = arith.constant 0 : i32
    return %arg0, %c0_i32 : i32, i32
  }
}

module attributes {stable_mosaic.version = 11 : i64} {
  func.func @proj_kernel(%arg0: i32, %arg1: memref<128x32xbf16, #tpu.memory_space<vmem>>, %arg2: memref<32x32xbf16, #tpu.memory_space<vmem>>, %arg3: memref<1x32xf32, #tpu.memory_space<vmem>>, %arg4: memref<128x32xf32, #tpu.memory_space<vmem>>) attributes {dimension_semantics = [#tpu.dimension_semantics<parallel>], iteration_bounds = array<i64: 1>, scalar_prefetch = 0 : i64, scratch_operands = 0 : i64, tpu.core_type = #tpu.core_type<tc>, window_params = [{transform_indices = @transform_0, window_bounds = array<i64: 128, 32>}, {pipeline_mode = #tpu.pipeline_mode<synchronous>, transform_indices = @transform_1, window_bounds = array<i64: 32, 32>}, {pipeline_mode = #tpu.pipeline_mode<synchronous>, transform_indices = @transform_2, window_bounds = array<i64: 1, 32>}, {transform_indices = @transform_3, window_bounds = array<i64: 128, 32>}]} {
    %c0 = arith.constant 0 : index
    %c0_0 = arith.constant 0 : index
    %0 = vector.load %arg1[%c0, %c0_0] : memref<128x32xbf16, #tpu.memory_space<vmem>>, vector<128x32xbf16>
    %c0_1 = arith.constant 0 : index
    %c0_2 = arith.constant 0 : index
    %1 = vector.load %arg2[%c0_1, %c0_2] : memref<32x32xbf16, #tpu.memory_space<vmem>>, vector<32x32xbf16>
    %cst = arith.constant dense<0.000000e+00> : vector<128x32xf32>
    %2 = tpu.matmul %0, %1, %cst {dimension_numbers = #tpu.dot_dimension_numbers<[1], [0], [0], [1], [0, 0, 1, 1], [], []>} : vector<128x32xbf16>, vector<32x32xbf16>, vector<128x32xf32> -> vector<128x32xf32>
    %c0_3 = arith.constant 0 : index
    %c0_4 = arith.constant 0 : index
    %3 = vector.load %arg3[%c0_3, %c0_4] : memref<1x32xf32, #tpu.memory_space<vmem>>, vector<1x32xf32>
    %4 = vector.broadcast %3 : vector<1x32xf32> to vector<128x32xf32>
    %5 = arith.addf %2, %4 : vector<128x32xf32>
    %c0_5 = arith.constant 0 : index
    %c0_6 = arith.constant 0 : index
    %6 = vector.load %arg4[%c0_5, %c0_6] : memref<128x32xf32, #tpu.memory_space<vmem>>, vector<128x32xf32>
    tpu.vector_store %arg4[%c0_5, %c0_6], %5 {strides = array<i32>} : memref<128x32xf32, #tpu.memory_space<vmem>>, vector<128x32xf32>,
    return
  }
  func.func @transform_0(%arg0: i32) -> (i32, i32) {
    %c0_i32 = arith.constant 0 : i32
    %c0_i32_0 = arith.constant 0 : i32
    return %arg0, %c0_i32 : i32, i32
  }
  func.func @transform_1(%arg0: i32) -> (i32, i32) {
    %c0_i32 = arith.constant 0 : i32
    %c0_i32_0 = arith.constant 0 : i32
    %c0_i32_1 = arith.constant 0 : i32
    return %c0_i32, %c0_i32_0 : i32, i32
  }
  func.func @transform_2(%arg0: i32) -> (i32, i32) {
    %c0_i32 = arith.constant 0 : i32
    %c0_i32_0 = arith.constant 0 : i32
    %c0_i32_1 = arith.constant 0 : i32
    return %c0_i32, %c0_i32_0 : i32, i32
  }
  func.func @transform_3(%arg0: i32) -> (i32, i32) {
    %c0_i32 = arith.constant 0 : i32
    %c0_i32_0 = arith.constant 0 : i32
    return %arg0, %c0_i32 : i32, i32
  }
}

module attributes {stable_mosaic.version = 11 : i64} {
  func.func @lstm_layer_kernel(%arg0: i32, %arg1: i32, %arg2: memref<16x8x128xbf16, #tpu.memory_space<vmem>>, %arg3: memref<32x128xbf16, #tpu.memory_space<vmem>>, %arg4: memref<16x8x32xbf16, #tpu.memory_space<vmem>>, %arg5: memref<8x32xf32, #tpu.memory_space<vmem>>, %arg6: memref<8x32xf32, #tpu.memory_space<vmem>>) attributes {dimension_semantics = [#tpu.dimension_semantics<parallel>, #tpu.dimension_semantics<arbitrary>], iteration_bounds = array<i64: 1, 1>, scalar_prefetch = 0 : i64, scratch_operands = 2 : i64, tpu.core_type = #tpu.core_type<tc>, window_params = [{transform_indices = @transform_0, window_bounds = array<i64: 16, 8, 128>}, {pipeline_mode = #tpu.pipeline_mode<synchronous>, transform_indices = @transform_1, window_bounds = array<i64: 32, 128>}, {transform_indices = @transform_2, window_bounds = array<i64: 16, 8, 32>}]} {
    %c0_i32 = arith.constant 0 : i32
    %0 = arith.cmpi eq, %arg1, %c0_i32 : i32
    %1 = arith.extui %0 : i1 to i32
    %c0_i32_0 = arith.constant 0 : i32
    %2 = arith.cmpi ne, %1, %c0_i32_0 : i32
    scf.if %2 {
      %cst = arith.constant 0.000000e+00 : f32
      %10 = vector.broadcast %cst : f32 to vector<8x32xf32>
      %c0_12 = arith.constant 0 : index
      %c0_13 = arith.constant 0 : index
      %11 = vector.load %arg5[%c0_12, %c0_13] : memref<8x32xf32, #tpu.memory_space<vmem>>, vector<8x32xf32>
      tpu.vector_store %arg5[%c0_12, %c0_13], %10 {strides = array<i32>} : memref<8x32xf32, #tpu.memory_space<vmem>>, vector<8x32xf32>,
      %cst_14 = arith.constant 0.000000e+00 : f32
      %12 = vector.broadcast %cst_14 : f32 to vector<8x32xf32>
      %c0_15 = arith.constant 0 : index
      %c0_16 = arith.constant 0 : index
      %13 = vector.load %arg6[%c0_15, %c0_16] : memref<8x32xf32, #tpu.memory_space<vmem>>, vector<8x32xf32>
      tpu.vector_store %arg6[%c0_15, %c0_16], %12 {strides = array<i32>} : memref<8x32xf32, #tpu.memory_space<vmem>>, vector<8x32xf32>,
    } else {
    }
    %c0 = arith.constant 0 : index
    %c0_1 = arith.constant 0 : index
    %3 = vector.load %arg3[%c0, %c0_1] : memref<32x128xbf16, #tpu.memory_space<vmem>>, vector<32x128xbf16>
    %c0_2 = arith.constant 0 : index
    %c0_3 = arith.constant 0 : index
    %4 = vector.load %arg5[%c0_2, %c0_3] : memref<8x32xf32, #tpu.memory_space<vmem>>, vector<8x32xf32>
    %c0_4 = arith.constant 0 : index
    %c0_5 = arith.constant 0 : index
    %5 = vector.load %arg6[%c0_4, %c0_5] : memref<8x32xf32, #tpu.memory_space<vmem>>, vector<8x32xf32>
    %c0_i32_6 = arith.constant 0 : i32
    %c4_i32 = arith.constant 4 : i32
    %6 = arith.addi %c0_i32_6, %c4_i32 : i32
    %c1_i32 = arith.constant 1 : i32
    %7:2 = scf.for %arg7 = %c0_i32_6 to %6 step %c1_i32 iter_args(%arg8 = %4, %arg9 = %5) -> (vector<8x32xf32>, vector<8x32xf32>)  : i32 {
      %c4_i32_12 = arith.constant 4 : i32
      %10 = arith.muli %arg7, %c4_i32_12 : i32
      %c0_i32_13 = arith.constant 0 : i32
      %11 = arith.addi %10, %c0_i32_13 : i32
      %12 = arith.index_cast %11 : i32 to index
      %c0_14 = arith.constant 0 : index
      %c0_15 = arith.constant 0 : index
      %13 = vector.load %arg2[%12, %c0_14, %c0_15] : memref<16x8x128xbf16, #tpu.memory_space<vmem>>, vector<1x8x128xbf16>
      %14 = vector.shape_cast %13 : vector<1x8x128xbf16> to vector<8x128xbf16>
      %15 = arith.extf %14 : vector<8x128xbf16> to vector<8x128xf32>
      %16 = arith.truncf %arg8 : vector<8x32xf32> to vector<8x32xbf16>
      %cst = arith.constant dense<0.000000e+00> : vector<8x128xf32>
      %17 = tpu.matmul %16, %3, %cst {dimension_numbers = #tpu.dot_dimension_numbers<[1], [0], [0], [1], [0, 0, 1, 1], [], []>} : vector<8x32xbf16>, vector<32x128xbf16>, vector<8x128xf32> -> vector<8x128xf32>
      %18 = arith.addf %15, %17 : vector<8x128xf32>
      %19 = vector.extract_strided_slice %18 {offsets = [0, 0], sizes = [8, 32], strides = [1, 1]} : vector<8x128xf32> to vector<8x32xf32>
      %cst_16 = arith.constant 0.000000e+00 : f32
      %20 = vector.broadcast %cst_16 : f32 to vector<8x32xf32>
      %21 = arith.subf %20, %19 : vector<8x32xf32>
      %22 = math.exp %21 : vector<8x32xf32>
      %cst_17 = arith.constant 1.000000e+00 : f32
      %23 = vector.broadcast %cst_17 : f32 to vector<8x32xf32>
      %24 = arith.addf %23, %22 : vector<8x32xf32>
      %cst_18 = arith.constant 1.000000e+00 : f32
      %25 = vector.broadcast %cst_18 : f32 to vector<8x32xf32>
      %26 = arith.divf %25, %24 : vector<8x32xf32>
      %27 = vector.extract_strided_slice %18 {offsets = [0, 32], sizes = [8, 32], strides = [1, 1]} : vector<8x128xf32> to vector<8x32xf32>
      %cst_19 = arith.constant 0.000000e+00 : f32
      %28 = vector.broadcast %cst_19 : f32 to vector<8x32xf32>
      %29 = arith.subf %28, %27 : vector<8x32xf32>
      %30 = math.exp %29 : vector<8x32xf32>
      %cst_20 = arith.constant 1.000000e+00 : f32
      %31 = vector.broadcast %cst_20 : f32 to vector<8x32xf32>
      %32 = arith.addf %31, %30 : vector<8x32xf32>
      %cst_21 = arith.constant 1.000000e+00 : f32
      %33 = vector.broadcast %cst_21 : f32 to vector<8x32xf32>
      %34 = arith.divf %33, %32 : vector<8x32xf32>
      %35 = vector.extract_strided_slice %18 {offsets = [0, 64], sizes = [8, 32], strides = [1, 1]} : vector<8x128xf32> to vector<8x32xf32>
      %36 = math.tanh %35 : vector<8x32xf32>
      %37 = vector.extract_strided_slice %18 {offsets = [0, 96], sizes = [8, 32], strides = [1, 1]} : vector<8x128xf32> to vector<8x32xf32>
      %cst_22 = arith.constant 0.000000e+00 : f32
      %38 = vector.broadcast %cst_22 : f32 to vector<8x32xf32>
      %39 = arith.subf %38, %37 : vector<8x32xf32>
      %40 = math.exp %39 : vector<8x32xf32>
      %cst_23 = arith.constant 1.000000e+00 : f32
      %41 = vector.broadcast %cst_23 : f32 to vector<8x32xf32>
      %42 = arith.addf %41, %40 : vector<8x32xf32>
      %cst_24 = arith.constant 1.000000e+00 : f32
      %43 = vector.broadcast %cst_24 : f32 to vector<8x32xf32>
      %44 = arith.divf %43, %42 : vector<8x32xf32>
      %45 = arith.mulf %34, %arg9 : vector<8x32xf32>
      %46 = arith.mulf %26, %36 : vector<8x32xf32>
      %47 = arith.addf %45, %46 : vector<8x32xf32>
      %48 = math.tanh %47 : vector<8x32xf32>
      %49 = arith.mulf %44, %48 : vector<8x32xf32>
      %50 = arith.truncf %49 : vector<8x32xf32> to vector<8x32xbf16>
      %51 = arith.index_cast %11 : i32 to index
      %c0_25 = arith.constant 0 : index
      %c0_26 = arith.constant 0 : index
      %52 = vector.load %arg4[%51, %c0_25, %c0_26] : memref<16x8x32xbf16, #tpu.memory_space<vmem>>, vector<1x8x32xbf16>
      %53 = vector.shape_cast %52 : vector<1x8x32xbf16> to vector<8x32xbf16>
      %54 = vector.shape_cast %50 : vector<8x32xbf16> to vector<1x8x32xbf16>
      tpu.vector_store %arg4[%51, %c0_25, %c0_26], %54 {strides = array<i32>} : memref<16x8x32xbf16, #tpu.memory_space<vmem>>, vector<1x8x32xbf16>,
      %c4_i32_27 = arith.constant 4 : i32
      %55 = arith.muli %arg7, %c4_i32_27 : i32
      %c1_i32_28 = arith.constant 1 : i32
      %56 = arith.addi %55, %c1_i32_28 : i32
      %57 = arith.index_cast %56 : i32 to index
      %c0_29 = arith.constant 0 : index
      %c0_30 = arith.constant 0 : index
      %58 = vector.load %arg2[%57, %c0_29, %c0_30] : memref<16x8x128xbf16, #tpu.memory_space<vmem>>, vector<1x8x128xbf16>
      %59 = vector.shape_cast %58 : vector<1x8x128xbf16> to vector<8x128xbf16>
      %60 = arith.extf %59 : vector<8x128xbf16> to vector<8x128xf32>
      %61 = arith.truncf %49 : vector<8x32xf32> to vector<8x32xbf16>
      %cst_31 = arith.constant dense<0.000000e+00> : vector<8x128xf32>
      %62 = tpu.matmul %61, %3, %cst_31 {dimension_numbers = #tpu.dot_dimension_numbers<[1], [0], [0], [1], [0, 0, 1, 1], [], []>} : vector<8x32xbf16>, vector<32x128xbf16>, vector<8x128xf32> -> vector<8x128xf32>
      %63 = arith.addf %60, %62 : vector<8x128xf32>
      %64 = vector.extract_strided_slice %63 {offsets = [0, 0], sizes = [8, 32], strides = [1, 1]} : vector<8x128xf32> to vector<8x32xf32>
      %cst_32 = arith.constant 0.000000e+00 : f32
      %65 = vector.broadcast %cst_32 : f32 to vector<8x32xf32>
      %66 = arith.subf %65, %64 : vector<8x32xf32>
      %67 = math.exp %66 : vector<8x32xf32>
      %cst_33 = arith.constant 1.000000e+00 : f32
      %68 = vector.broadcast %cst_33 : f32 to vector<8x32xf32>
      %69 = arith.addf %68, %67 : vector<8x32xf32>
      %cst_34 = arith.constant 1.000000e+00 : f32
      %70 = vector.broadcast %cst_34 : f32 to vector<8x32xf32>
      %71 = arith.divf %70, %69 : vector<8x32xf32>
      %72 = vector.extract_strided_slice %63 {offsets = [0, 32], sizes = [8, 32], strides = [1, 1]} : vector<8x128xf32> to vector<8x32xf32>
      %cst_35 = arith.constant 0.000000e+00 : f32
      %73 = vector.broadcast %cst_35 : f32 to vector<8x32xf32>
      %74 = arith.subf %73, %72 : vector<8x32xf32>
      %75 = math.exp %74 : vector<8x32xf32>
      %cst_36 = arith.constant 1.000000e+00 : f32
      %76 = vector.broadcast %cst_36 : f32 to vector<8x32xf32>
      %77 = arith.addf %76, %75 : vector<8x32xf32>
      %cst_37 = arith.constant 1.000000e+00 : f32
      %78 = vector.broadcast %cst_37 : f32 to vector<8x32xf32>
      %79 = arith.divf %78, %77 : vector<8x32xf32>
      %80 = vector.extract_strided_slice %63 {offsets = [0, 64], sizes = [8, 32], strides = [1, 1]} : vector<8x128xf32> to vector<8x32xf32>
      %81 = math.tanh %80 : vector<8x32xf32>
      %82 = vector.extract_strided_slice %63 {offsets = [0, 96], sizes = [8, 32], strides = [1, 1]} : vector<8x128xf32> to vector<8x32xf32>
      %cst_38 = arith.constant 0.000000e+00 : f32
      %83 = vector.broadcast %cst_38 : f32 to vector<8x32xf32>
      %84 = arith.subf %83, %82 : vector<8x32xf32>
      %85 = math.exp %84 : vector<8x32xf32>
      %cst_39 = arith.constant 1.000000e+00 : f32
      %86 = vector.broadcast %cst_39 : f32 to vector<8x32xf32>
      %87 = arith.addf %86, %85 : vector<8x32xf32>
      %cst_40 = arith.constant 1.000000e+00 : f32
      %88 = vector.broadcast %cst_40 : f32 to vector<8x32xf32>
      %89 = arith.divf %88, %87 : vector<8x32xf32>
      %90 = arith.mulf %79, %47 : vector<8x32xf32>
      %91 = arith.mulf %71, %81 : vector<8x32xf32>
      %92 = arith.addf %90, %91 : vector<8x32xf32>
      %93 = math.tanh %92 : vector<8x32xf32>
      %94 = arith.mulf %89, %93 : vector<8x32xf32>
      %95 = arith.truncf %94 : vector<8x32xf32> to vector<8x32xbf16>
      %96 = arith.index_cast %56 : i32 to index
      %c0_41 = arith.constant 0 : index
      %c0_42 = arith.constant 0 : index
      %97 = vector.load %arg4[%96, %c0_41, %c0_42] : memref<16x8x32xbf16, #tpu.memory_space<vmem>>, vector<1x8x32xbf16>
      %98 = vector.shape_cast %97 : vector<1x8x32xbf16> to vector<8x32xbf16>
      %99 = vector.shape_cast %95 : vector<8x32xbf16> to vector<1x8x32xbf16>
      tpu.vector_store %arg4[%96, %c0_41, %c0_42], %99 {strides = array<i32>} : memref<16x8x32xbf16, #tpu.memory_space<vmem>>, vector<1x8x32xbf16>,
      %c4_i32_43 = arith.constant 4 : i32
      %100 = arith.muli %arg7, %c4_i32_43 : i32
      %c2_i32 = arith.constant 2 : i32
      %101 = arith.addi %100, %c2_i32 : i32
      %102 = arith.index_cast %101 : i32 to index
      %c0_44 = arith.constant 0 : index
      %c0_45 = arith.constant 0 : index
      %103 = vector.load %arg2[%102, %c0_44, %c0_45] : memref<16x8x128xbf16, #tpu.memory_space<vmem>>, vector<1x8x128xbf16>
      %104 = vector.shape_cast %103 : vector<1x8x128xbf16> to vector<8x128xbf16>
      %105 = arith.extf %104 : vector<8x128xbf16> to vector<8x128xf32>
      %106 = arith.truncf %94 : vector<8x32xf32> to vector<8x32xbf16>
      %cst_46 = arith.constant dense<0.000000e+00> : vector<8x128xf32>
      %107 = tpu.matmul %106, %3, %cst_46 {dimension_numbers = #tpu.dot_dimension_numbers<[1], [0], [0], [1], [0, 0, 1, 1], [], []>} : vector<8x32xbf16>, vector<32x128xbf16>, vector<8x128xf32> -> vector<8x128xf32>
      %108 = arith.addf %105, %107 : vector<8x128xf32>
      %109 = vector.extract_strided_slice %108 {offsets = [0, 0], sizes = [8, 32], strides = [1, 1]} : vector<8x128xf32> to vector<8x32xf32>
      %cst_47 = arith.constant 0.000000e+00 : f32
      %110 = vector.broadcast %cst_47 : f32 to vector<8x32xf32>
      %111 = arith.subf %110, %109 : vector<8x32xf32>
      %112 = math.exp %111 : vector<8x32xf32>
      %cst_48 = arith.constant 1.000000e+00 : f32
      %113 = vector.broadcast %cst_48 : f32 to vector<8x32xf32>
      %114 = arith.addf %113, %112 : vector<8x32xf32>
      %cst_49 = arith.constant 1.000000e+00 : f32
      %115 = vector.broadcast %cst_49 : f32 to vector<8x32xf32>
      %116 = arith.divf %115, %114 : vector<8x32xf32>
      %117 = vector.extract_strided_slice %108 {offsets = [0, 32], sizes = [8, 32], strides = [1, 1]} : vector<8x128xf32> to vector<8x32xf32>
      %cst_50 = arith.constant 0.000000e+00 : f32
      %118 = vector.broadcast %cst_50 : f32 to vector<8x32xf32>
      %119 = arith.subf %118, %117 : vector<8x32xf32>
      %120 = math.exp %119 : vector<8x32xf32>
      %cst_51 = arith.constant 1.000000e+00 : f32
      %121 = vector.broadcast %cst_51 : f32 to vector<8x32xf32>
      %122 = arith.addf %121, %120 : vector<8x32xf32>
      %cst_52 = arith.constant 1.000000e+00 : f32
      %123 = vector.broadcast %cst_52 : f32 to vector<8x32xf32>
      %124 = arith.divf %123, %122 : vector<8x32xf32>
      %125 = vector.extract_strided_slice %108 {offsets = [0, 64], sizes = [8, 32], strides = [1, 1]} : vector<8x128xf32> to vector<8x32xf32>
      %126 = math.tanh %125 : vector<8x32xf32>
      %127 = vector.extract_strided_slice %108 {offsets = [0, 96], sizes = [8, 32], strides = [1, 1]} : vector<8x128xf32> to vector<8x32xf32>
      %cst_53 = arith.constant 0.000000e+00 : f32
      %128 = vector.broadcast %cst_53 : f32 to vector<8x32xf32>
      %129 = arith.subf %128, %127 : vector<8x32xf32>
      %130 = math.exp %129 : vector<8x32xf32>
      %cst_54 = arith.constant 1.000000e+00 : f32
      %131 = vector.broadcast %cst_54 : f32 to vector<8x32xf32>
      %132 = arith.addf %131, %130 : vector<8x32xf32>
      %cst_55 = arith.constant 1.000000e+00 : f32
      %133 = vector.broadcast %cst_55 : f32 to vector<8x32xf32>
      %134 = arith.divf %133, %132 : vector<8x32xf32>
      %135 = arith.mulf %124, %92 : vector<8x32xf32>
      %136 = arith.mulf %116, %126 : vector<8x32xf32>
      %137 = arith.addf %135, %136 : vector<8x32xf32>
      %138 = math.tanh %137 : vector<8x32xf32>
      %139 = arith.mulf %134, %138 : vector<8x32xf32>
      %140 = arith.truncf %139 : vector<8x32xf32> to vector<8x32xbf16>
      %141 = arith.index_cast %101 : i32 to index
      %c0_56 = arith.constant 0 : index
      %c0_57 = arith.constant 0 : index
      %142 = vector.load %arg4[%141, %c0_56, %c0_57] : memref<16x8x32xbf16, #tpu.memory_space<vmem>>, vector<1x8x32xbf16>
      %143 = vector.shape_cast %142 : vector<1x8x32xbf16> to vector<8x32xbf16>
      %144 = vector.shape_cast %140 : vector<8x32xbf16> to vector<1x8x32xbf16>
      tpu.vector_store %arg4[%141, %c0_56, %c0_57], %144 {strides = array<i32>} : memref<16x8x32xbf16, #tpu.memory_space<vmem>>, vector<1x8x32xbf16>,
      %c4_i32_58 = arith.constant 4 : i32
      %145 = arith.muli %arg7, %c4_i32_58 : i32
      %c3_i32 = arith.constant 3 : i32
      %146 = arith.addi %145, %c3_i32 : i32
      %147 = arith.index_cast %146 : i32 to index
      %c0_59 = arith.constant 0 : index
      %c0_60 = arith.constant 0 : index
      %148 = vector.load %arg2[%147, %c0_59, %c0_60] : memref<16x8x128xbf16, #tpu.memory_space<vmem>>, vector<1x8x128xbf16>
      %149 = vector.shape_cast %148 : vector<1x8x128xbf16> to vector<8x128xbf16>
      %150 = arith.extf %149 : vector<8x128xbf16> to vector<8x128xf32>
      %151 = arith.truncf %139 : vector<8x32xf32> to vector<8x32xbf16>
      %cst_61 = arith.constant dense<0.000000e+00> : vector<8x128xf32>
      %152 = tpu.matmul %151, %3, %cst_61 {dimension_numbers = #tpu.dot_dimension_numbers<[1], [0], [0], [1], [0, 0, 1, 1], [], []>} : vector<8x32xbf16>, vector<32x128xbf16>, vector<8x128xf32> -> vector<8x128xf32>
      %153 = arith.addf %150, %152 : vector<8x128xf32>
      %154 = vector.extract_strided_slice %153 {offsets = [0, 0], sizes = [8, 32], strides = [1, 1]} : vector<8x128xf32> to vector<8x32xf32>
      %cst_62 = arith.constant 0.000000e+00 : f32
      %155 = vector.broadcast %cst_62 : f32 to vector<8x32xf32>
      %156 = arith.subf %155, %154 : vector<8x32xf32>
      %157 = math.exp %156 : vector<8x32xf32>
      %cst_63 = arith.constant 1.000000e+00 : f32
      %158 = vector.broadcast %cst_63 : f32 to vector<8x32xf32>
      %159 = arith.addf %158, %157 : vector<8x32xf32>
      %cst_64 = arith.constant 1.000000e+00 : f32
      %160 = vector.broadcast %cst_64 : f32 to vector<8x32xf32>
      %161 = arith.divf %160, %159 : vector<8x32xf32>
      %162 = vector.extract_strided_slice %153 {offsets = [0, 32], sizes = [8, 32], strides = [1, 1]} : vector<8x128xf32> to vector<8x32xf32>
      %cst_65 = arith.constant 0.000000e+00 : f32
      %163 = vector.broadcast %cst_65 : f32 to vector<8x32xf32>
      %164 = arith.subf %163, %162 : vector<8x32xf32>
      %165 = math.exp %164 : vector<8x32xf32>
      %cst_66 = arith.constant 1.000000e+00 : f32
      %166 = vector.broadcast %cst_66 : f32 to vector<8x32xf32>
      %167 = arith.addf %166, %165 : vector<8x32xf32>
      %cst_67 = arith.constant 1.000000e+00 : f32
      %168 = vector.broadcast %cst_67 : f32 to vector<8x32xf32>
      %169 = arith.divf %168, %167 : vector<8x32xf32>
      %170 = vector.extract_strided_slice %153 {offsets = [0, 64], sizes = [8, 32], strides = [1, 1]} : vector<8x128xf32> to vector<8x32xf32>
      %171 = math.tanh %170 : vector<8x32xf32>
      %172 = vector.extract_strided_slice %153 {offsets = [0, 96], sizes = [8, 32], strides = [1, 1]} : vector<8x128xf32> to vector<8x32xf32>
      %cst_68 = arith.constant 0.000000e+00 : f32
      %173 = vector.broadcast %cst_68 : f32 to vector<8x32xf32>
      %174 = arith.subf %173, %172 : vector<8x32xf32>
      %175 = math.exp %174 : vector<8x32xf32>
      %cst_69 = arith.constant 1.000000e+00 : f32
      %176 = vector.broadcast %cst_69 : f32 to vector<8x32xf32>
      %177 = arith.addf %176, %175 : vector<8x32xf32>
      %cst_70 = arith.constant 1.000000e+00 : f32
      %178 = vector.broadcast %cst_70 : f32 to vector<8x32xf32>
      %179 = arith.divf %178, %177 : vector<8x32xf32>
      %180 = arith.mulf %169, %137 : vector<8x32xf32>
      %181 = arith.mulf %161, %171 : vector<8x32xf32>
      %182 = arith.addf %180, %181 : vector<8x32xf32>
      %183 = math.tanh %182 : vector<8x32xf32>
      %184 = arith.mulf %179, %183 : vector<8x32xf32>
      %185 = arith.truncf %184 : vector<8x32xf32> to vector<8x32xbf16>
      %186 = arith.index_cast %146 : i32 to index
      %c0_71 = arith.constant 0 : index
      %c0_72 = arith.constant 0 : index
      %187 = vector.load %arg4[%186, %c0_71, %c0_72] : memref<16x8x32xbf16, #tpu.memory_space<vmem>>, vector<1x8x32xbf16>
      %188 = vector.shape_cast %187 : vector<1x8x32xbf16> to vector<8x32xbf16>
      %189 = vector.shape_cast %185 : vector<8x32xbf16> to vector<1x8x32xbf16>
      tpu.vector_store %arg4[%186, %c0_71, %c0_72], %189 {strides = array<i32>} : memref<16x8x32xbf16, #tpu.memory_space<vmem>>, vector<1x8x32xbf16>,
      scf.yield %184, %182 : vector<8x32xf32>, vector<8x32xf32>
    }
    %c4_i32_7 = arith.constant 4 : i32
    %c0_8 = arith.constant 0 : index
    %c0_9 = arith.constant 0 : index
    %8 = vector.load %arg5[%c0_8, %c0_9] : memref<8x32xf32, #tpu.memory_space<vmem>>, vector<8x32xf32>
    tpu.vector_store %arg5[%c0_8, %c0_9], %7#0 {strides = array<i32>} : memref<8x32xf32, #tpu.memory_space<vmem>>, vector<8x32xf32>,
    %c0_10 = arith.constant 0 : index
    %c0_11 = arith.constant 0 : index
    %9 = vector.load %arg6[%c0_10, %c0_11] : memref<8x32xf32, #tpu.memory_space<vmem>>, vector<8x32xf32>
    tpu.vector_store %arg6[%c0_10, %c0_11], %7#1 {strides = array<i32>} : memref<8x32xf32, #tpu.memory_space<vmem>>, vector<8x32xf32>,
    return
  }
  func.func @transform_0(%arg0: i32, %arg1: i32) -> (i32, i32, i32) {
    %c0_i32 = arith.constant 0 : i32
    %c0_i32_0 = arith.constant 0 : i32
    return %arg1, %arg0, %c0_i32 : i32, i32, i32
  }
  func.func @transform_1(%arg0: i32, %arg1: i32) -> (i32, i32) {
    %c0_i32 = arith.constant 0 : i32
    %c0_i32_0 = arith.constant 0 : i32
    %c0_i32_1 = arith.constant 0 : i32
    return %c0_i32, %c0_i32_0 : i32, i32
  }
  func.func @transform_2(%arg0: i32, %arg1: i32) -> (i32, i32, i32) {
    %c0_i32 = arith.constant 0 : i32
    %c0_i32_0 = arith.constant 0 : i32
    return %arg1, %arg0, %c0_i32 : i32, i32, i32
  }
}

</mosaic_0001>

<bundles_post_ra>
// kernel: ricbe_bottleneck_forward.7
= control target key start
LH: loop header
LB: loop body
LE: loop exit
PB: predicated region body
PF: predicated region fallthrough
CT: control target
= control target key end

     0   :  { %vm94_vm0 = vcmask 261120   ;;  %s527_s1 = inlined_call_operand.vmem [shape: bf16[32,128], index: 1, kind: input, shape index: {}]   ;;  %s528_s0 = inlined_call_operand.vmem [shape: bf16[128,32], index: 0, kind: input, shape index: {}]   ;;  %s529_s2 = inlined_call_operand.vmem [shape: f32[1,128], index: 2, kind: input, shape index: {}]   ;;  %s530_s3 = inlined_call_operand.vmem [shape: bf16[128,128], index: 3, kind: output, shape index: {}]  }
   0x1   :  { %v432_v0 = vld [vmem:[%s527_s1 + $0x8] sm:$0xff]   ;;  %v433_v1 = vld [vmem:[%s527_s1] sm:$0xff]   ;;  %v438_v6 = vld [vmem:[%s528_s0 + $0x10] sm:$0xff]  }
   0x2   :  { %408 = vmatprep.subr.bf16.mxu0 %v432_v0  ;;  %428 = vmatprep.subr.bf16.mxu1 %v432_v0  ;;  %v434_v2 = vld [vmem:[%s528_s0] sm:$0xff]   ;;  %v436_v4 = vld [vmem:[%s528_s0 + $0x8] sm:$0xff]   ;;  %v439_v7 = vld [vmem:[%s528_s0 + $0x30] sm:$0xff]  }
   0x3   :  { %409 = vmatpush3.bf16.msra.mxu0 %v432_v0  ;;  %430 = vmatpush3.bf16.msra.mxu1 %v432_v0  ;;  %v435_v3 = vld [vmem:[%s528_s0 + $0x20] sm:$0xff]   ;;  %v437_v5 = vld [vmem:[%s528_s0 + $0x28] sm:$0xff]   ;;  %v440_v8 = vld [vmem:[%s528_s0 + $0x18] sm:$0xff]  }
   0x4   :  { %410 = vmatprep.subr.bf16.mxu0 %v433_v1  ;;  %429 = vmatprep.subr.bf16.mxu1 %v433_v1  ;;  %v441_v9 = vld [vmem:[%s528_s0 + $0x38] sm:$0xff]   ;;  %v300_v12 = vld [vmem:[%s529_s2] ss:$0 sm:$0xff] }
   0x5   :  { %412 = vmatprep.mubr.msk.bf16.mxu0 %vm94_vm0, %v434_v2  ;;  %420 = vmatprep.mubr.msk.bf16.mxu1 %vm94_vm0, %v435_v3 }
   0x7   :  { %411 = vmatpush3.bf16.msra.mxu0 %v433_v1  ;;  %431 = vmatpush3.bf16.msra.mxu1 %v433_v1 }
   0xa   :  { %413 = vmatmul.mubr.msk.bf16.vlgmr.msra.gmra.mxu0 %vm94_vm0, %v436_v4  ;;  %421 = vmatmul.mubr.msk.bf16.vlgmr.msra.gmra.mxu1 %vm94_vm0, %v437_v5 }
   0xb   :  { %416 = vmatprep.mubr.msk.bf16.mxu0 %vm94_vm0, %v438_v6  ;;  %424 = vmatprep.mubr.msk.bf16.mxu1 %vm94_vm0, %v439_v7 }
  0x12   :  { %417 = vmatmul.mubr.msk.bf16.gmra.mxu0 %vm94_vm0, %v440_v8  ;;  %425 = vmatmul.mubr.msk.bf16.gmra.mxu1 %vm94_vm0, %v441_v9 }
  0xca   :  { %v414_v10 = vpop.f32.mrf.mxu0  ;;  %v422_v11 = vpop.f32.mrf.mxu1 }
  0xcb   :  { %v162_v17 = vadd.f32 %v414_v10, %v300_v12  ;;  %v194_v18 = vadd.f32 %v422_v11, %v300_v12 }
  0xcc   :  { %v153_v13 = vpop.f32.mrf.mxu0  ;;  %v185_v14 = vpop.f32.mrf.mxu1 }
  0xcd   :  { %v154_v21 = vadd.f32 %v300_v12, %v153_v13  ;;  %v186_v22 = vadd.f32 %v300_v12, %v185_v14 }
  0xce   :  { %v415_v15 = vpop.f32.mrf.mxu0  ;;  %v423_v16 = vpop.f32.mrf.mxu1 }
  0xcf   :  { %v165_v19 = vadd.f32 %v415_v15, %v300_v12  ;;  %v197_v20 = vadd.f32 %v423_v16, %v300_v12 }
  0xd0   :  { %v156_v23 = vpop.f32.mrf.mxu0  ;;  %v188_v24 = vpop.f32.mrf.mxu1 }
  0xd1   :  { %v359_v25 = vpack.c.bf16 %v165_v19, %v162_v17  ;;  %v379_v26 = vpack.c.bf16 %v197_v20, %v194_v18  ;;  %v157_v27 = vadd.f32 %v300_v12, %v156_v23  ;;  %v189_v28 = vadd.f32 %v300_v12, %v188_v24 }
  0xd2   :  { %v418_v29 = vpop.f32.mrf.mxu0  ;;  %v426_v30 = vpop.f32.mrf.mxu1 }
  0xd3   :  { %391 = vst [vmem:[%s530_s3 + $0x8] sm:$0xff] %v359_v25   ;;  %395 = vst [vmem:[%s530_s3 + $0x28] sm:$0xff] %v379_v26   ;;  %v354_v31 = vpack.c.bf16 %v157_v27, %v154_v21  ;;  %v374_v32 = vpack.c.bf16 %v189_v28, %v186_v22  ;;  %v178_v37 = vadd.f32 %v418_v29, %v300_v12 }
  0xd4   :  { %v169_v33 = vpop.f32.mrf.mxu0  ;;  %v201_v34 = vpop.f32.mrf.mxu1  ;;  %v210_v38 = vadd.f32 %v426_v30, %v300_v12 }
  0xd5   :  { %355 = vst [vmem:[%s530_s3] sm:$0xff] %v354_v31   ;;  %394 = vst [vmem:[%s530_s3 + $0x20] sm:$0xff] %v374_v32   ;;  %v170_v41 = vadd.f32 %v300_v12, %v169_v33  ;;  %v202_v42 = vadd.f32 %v300_v12, %v201_v34 }
  0xd6   :  { %v419_v35 = vpop.f32.mrf.mxu0  ;;  %v427_v36 = vpop.f32.mrf.mxu1 }
  0xd7   :  { %v181_v39 = vadd.f32 %v419_v35, %v300_v12  ;;  %v213_v40 = vadd.f32 %v427_v36, %v300_v12 }
  0xd8   :  { %v172_v43 = vpop.f32.mrf.mxu0  ;;  %v204_v44 = vpop.f32.mrf.mxu1 }
  0xd9   :  { %v369_v45 = vpack.c.bf16 %v181_v39, %v178_v37  ;;  %v389_v46 = vpack.c.bf16 %v213_v40, %v210_v38  ;;  %v173_v47 = vadd.f32 %v300_v12, %v172_v43  ;;  %v205_v48 = vadd.f32 %v300_v12, %v204_v44 }
  0xdb   :  { %393 = vst [vmem:[%s530_s3 + $0x18] sm:$0xff] %v369_v45   ;;  %397 = vst [vmem:[%s530_s3 + $0x38] sm:$0xff] %v389_v46   ;;  %v364_v49 = vpack.c.bf16 %v173_v47, %v170_v41  ;;  %v384_v50 = vpack.c.bf16 %v205_v48, %v202_v42 }
  0xdd   :  { %392 = vst [vmem:[%s530_s3 + $0x10] sm:$0xff] %v364_v49   ;;  %396 = vst [vmem:[%s530_s3 + $0x30] sm:$0xff] %v384_v50  }

// kernel: ricbe_bottleneck_forward.9
= control target key start
LH: loop header
LB: loop body
LE: loop exit
PB: predicated region body
PF: predicated region fallthrough
CT: control target
= control target key end

     0   :  { %vm94_vm0 = vcmask 261120   ;;  %s424_s1 = inlined_call_operand.vmem [shape: bf16[32,32], index: 1, kind: input, shape index: {}]   ;;  %s425_s0 = inlined_call_operand.vmem [shape: bf16[128,32], index: 0, kind: input, shape index: {}]   ;;  %s426_s2 = inlined_call_operand.vmem [shape: f32[1,32], index: 2, kind: input, shape index: {}]   ;;  %s427_s3 = inlined_call_operand.vmem [shape: f32[128,32], index: 3, kind: output, shape index: {}]  }
   0x1   :  { %v289_v0 = vld [vmem:[%s424_s1 + $0x8] sm:$0xff]   ;;  %v290_v1 = vld [vmem:[%s424_s1] sm:$0xff]   ;;  %v295_v6 = vld [vmem:[%s425_s0 + $0x10] sm:$0xff]  }
   0x2   :  { %265 = vmatprep.subr.bf16.mxu0 %v289_v0  ;;  %285 = vmatprep.subr.bf16.mxu1 %v289_v0  ;;  %v291_v2 = vld [vmem:[%s425_s0] sm:$0xff]   ;;  %v293_v4 = vld [vmem:[%s425_s0 + $0x8] sm:$0xff]   ;;  %v296_v7 = vld [vmem:[%s425_s0 + $0x30] sm:$0xff]  }
   0x3   :  { %266 = vmatpush3.bf16.msra.mxu0 %v289_v0  ;;  %287 = vmatpush3.bf16.msra.mxu1 %v289_v0  ;;  %v292_v3 = vld [vmem:[%s425_s0 + $0x20] sm:$0xff]   ;;  %v294_v5 = vld [vmem:[%s425_s0 + $0x28] sm:$0xff]   ;;  %v297_v8 = vld [vmem:[%s425_s0 + $0x18] sm:$0xff]  }
   0x4   :  { %267 = vmatprep.subr.bf16.mxu0 %v290_v1  ;;  %286 = vmatprep.subr.bf16.mxu1 %v290_v1  ;;  %v298_v9 = vld [vmem:[%s425_s0 + $0x38] sm:$0xff]   ;;  %v236_v10 = vld [vmem:[%s426_s2] ss:$0 sm:$0xff] }
   0x5   :  { %269 = vmatprep.mubr.msk.bf16.mxu0 %vm94_vm0, %v291_v2  ;;  %277 = vmatprep.mubr.msk.bf16.mxu1 %vm94_vm0, %v292_v3 }
   0x7   :  { %268 = vmatpush3.bf16.msra.mxu0 %v290_v1  ;;  %288 = vmatpush3.bf16.msra.mxu1 %v290_v1 }
   0xa   :  { %270 = vmatmul.mubr.msk.bf16.vlgmr.msra.gmra.mxu0 %vm94_vm0, %v293_v4  ;;  %278 = vmatmul.mubr.msk.bf16.vlgmr.msra.gmra.mxu1 %vm94_vm0, %v294_v5 }
   0xb   :  { %273 = vmatprep.mubr.msk.bf16.mxu0 %vm94_vm0, %v295_v6  ;;  %281 = vmatprep.mubr.msk.bf16.mxu1 %vm94_vm0, %v296_v7 }
  0x12   :  { %274 = vmatmul.mubr.msk.bf16.gmra.mxu0 %vm94_vm0, %v297_v8  ;;  %282 = vmatmul.mubr.msk.bf16.gmra.mxu1 %vm94_vm0, %v298_v9 }
  0xca   :  { %v271_v11 = vpop.f32.mrf.mxu0  ;;  %v279_v12 = vpop.f32.mrf.mxu1 }
  0xcb   :  { %v162_v13 = vadd.f32 %v271_v11, %v236_v10  ;;  %v194_v14 = vadd.f32 %v279_v12, %v236_v10 }
  0xcc   :  { %v153_v15 = vpop.f32.mrf.mxu0  ;;  %v185_v16 = vpop.f32.mrf.mxu1 }
  0xcd   :  { %218 = vst.msk [vmem:[%s427_s3 + $0x10] sm:$0xff] %vm94_vm0, %v162_v13  ;;  %226 = vst.msk [vmem:[%s427_s3 + $0x50] sm:$0xff] %vm94_vm0, %v194_v14  ;;  %v154_v17 = vadd.f32 %v236_v10, %v153_v15  ;;  %v186_v18 = vadd.f32 %v236_v10, %v185_v16 }
  0xce   :  { %v272_v19 = vpop.f32.mrf.mxu0  ;;  %v280_v20 = vpop.f32.mrf.mxu1 }
  0xcf   :  { %216 = vst.msk [vmem:[%s427_s3] sm:$0xff] %vm94_vm0, %v154_v17  ;;  %224 = vst.msk [vmem:[%s427_s3 + $0x40] sm:$0xff] %vm94_vm0, %v186_v18  ;;  %v165_v21 = vadd.f32 %v272_v19, %v236_v10  ;;  %v197_v22 = vadd.f32 %v280_v20, %v236_v10 }
  0xd0   :  { %v156_v23 = vpop.f32.mrf.mxu0  ;;  %v188_v24 = vpop.f32.mrf.mxu1 }
  0xd1   :  { %219 = vst.msk [vmem:[%s427_s3 + $0x18] sm:$0xff] %vm94_vm0, %v165_v21  ;;  %227 = vst.msk [vmem:[%s427_s3 + $0x58] sm:$0xff] %vm94_vm0, %v197_v22  ;;  %v157_v25 = vadd.f32 %v236_v10, %v156_v23  ;;  %v189_v26 = vadd.f32 %v236_v10, %v188_v24 }
  0xd2   :  { %v275_v27 = vpop.f32.mrf.mxu0  ;;  %v283_v28 = vpop.f32.mrf.mxu1 }
  0xd3   :  { %217 = vst.msk [vmem:[%s427_s3 + $0x8] sm:$0xff] %vm94_vm0, %v157_v25  ;;  %225 = vst.msk [vmem:[%s427_s3 + $0x48] sm:$0xff] %vm94_vm0, %v189_v26  ;;  %v178_v29 = vadd.f32 %v275_v27, %v236_v10  ;;  %v210_v30 = vadd.f32 %v283_v28, %v236_v10 }
  0xd4   :  { %v169_v31 = vpop.f32.mrf.mxu0  ;;  %v201_v32 = vpop.f32.mrf.mxu1 }
  0xd5   :  { %222 = vst.msk [vmem:[%s427_s3 + $0x30] sm:$0xff] %vm94_vm0, %v178_v29  ;;  %230 = vst.msk [vmem:[%s427_s3 + $0x70] sm:$0xff] %vm94_vm0, %v210_v30  ;;  %v170_v33 = vadd.f32 %v236_v10, %v169_v31  ;;  %v202_v34 = vadd.f32 %v236_v10, %v201_v32 }
  0xd6   :  { %v276_v35 = vpop.f32.mrf.mxu0  ;;  %v284_v36 = vpop.f32.mrf.mxu1 }
  0xd7   :  { %220 = vst.msk [vmem:[%s427_s3 + $0x20] sm:$0xff] %vm94_vm0, %v170_v33  ;;  %228 = vst.msk [vmem:[%s427_s3 + $0x60] sm:$0xff] %vm94_vm0, %v202_v34  ;;  %v181_v37 = vadd.f32 %v276_v35, %v236_v10  ;;  %v213_v38 = vadd.f32 %v284_v36, %v236_v10 }
  0xd8   :  { %v172_v39 = vpop.f32.mrf.mxu0  ;;  %v204_v40 = vpop.f32.mrf.mxu1 }
  0xd9   :  { %223 = vst.msk [vmem:[%s427_s3 + $0x38] sm:$0xff] %vm94_vm0, %v181_v37  ;;  %231 = vst.msk [vmem:[%s427_s3 + $0x78] sm:$0xff] %vm94_vm0, %v213_v38  ;;  %v173_v41 = vadd.f32 %v236_v10, %v172_v39  ;;  %v205_v42 = vadd.f32 %v236_v10, %v204_v40 }
  0xdb   :  { %221 = vst.msk [vmem:[%s427_s3 + $0x28] sm:$0xff] %vm94_vm0, %v173_v41  ;;  %229 = vst.msk [vmem:[%s427_s3 + $0x68] sm:$0xff] %vm94_vm0, %v205_v42 }

// kernel: ricbe_bottleneck_forward.5
= control target key start
LH: loop header
LB: loop body
LE: loop exit
PB: predicated region body
PF: predicated region fallthrough
CT: control target
= control target key end

     0   :  { %vm135_vm0 = vcmask 785408   ;;  %vm343_vm5 = vcmask 261120   ;;  %s919_s1 = inlined_call_operand.vmem [shape: bf16[96,32], index: 1, kind: input, shape index: {}]   ;;  %s920_s0 = inlined_call_operand.vmem [shape: bf16[128,96], index: 0, kind: input, shape index: {}]   ;;  %s921_s4 = inlined_call_operand.vmem [shape: bf16[32,128], index: 4, kind: input, shape index: {}]   ;;  %s922_s2 = inlined_call_operand.vmem [shape: f32[1,32], index: 2, kind: input, shape index: {}]   ;;  %s923_s3 = inlined_call_operand.vmem [shape: f32[1,32], index: 3, kind: input, shape index: {}]   ;;  %s924_s5 = inlined_call_operand.vmem [shape: f32[1,128], index: 5, kind: input, shape index: {}]   ;;  %s925_s6 = inlined_call_operand.vmem [shape: bf16[128,128], index: 6, kind: output, shape index: {}]  }
   0x1   :  { %v735_v0 = vld [vmem:[%s919_s1 + $0x28] sm:$0xff]   ;;  %v736_v1 = vld [vmem:[%s919_s1 + $0x20] sm:$0xff]   ;;  %v737_v2 = vld [vmem:[%s919_s1 + $0x18] sm:$0xff]  }
   0x2   :  { %687 = vmatprep.subr.bf16.mxu0 %v735_v0  ;;  %v741_v3 = vld [vmem:[%s920_s0] sm:$0xff]   ;;  %v738_v4 = vld [vmem:[%s919_s1 + $0x10] sm:$0xff]   ;;  %v739_v5 = vld [vmem:[%s919_s1 + $0x8] sm:$0xff]  }
   0x3   :  { %688 = vmatpush3.bf16.msra.mxu0 %v735_v0  ;;  %699 = vmatprep.mubr.msk.bf16.mxu0 %vm135_vm0, %v741_v3  ;;  %v740_v6 = vld [vmem:[%s919_s1] sm:$0xff]   ;;  %v742_v7 = vld [vmem:[%s920_s0 + $0x8] sm:$0xff]   ;;  %v743_v8 = vld [vmem:[%s920_s0 + $0x10] sm:$0xff]  }
   0x4   :  { %689 = vmatprep.subr.bf16.mxu0 %v736_v1  ;;  %v744_v9 = vld [vmem:[%s920_s0 + $0x18] sm:$0xff]   ;;  %v745_v10 = vld [vmem:[%s920_s0 + $0x20] sm:$0xff]   ;;  %v746_v11 = vld [vmem:[%s920_s0 + $0x28] sm:$0xff]  }
   0x5   :  { %v747_v12 = vld [vmem:[%s920_s0 + $0x30] sm:$0xff]   ;;  %v748_v13 = vld [vmem:[%s920_s0 + $0x38] sm:$0xff]   ;;  %v749_v14 = vld [vmem:[%s921_s4 + $0x8] sm:$0xff]  }
   0x6   :  { %715 = vmatprep.subr.bf16.mxu1 %v749_v14  ;;  %v750_v15 = vld [vmem:[%s921_s4] sm:$0xff]  }
   0x7   :  { %690 = vmatpush3.bf16.msra.mxu0 %v736_v1  ;;  %716 = vmatpush3.bf16.msra.mxu1 %v749_v14  ;;  %v845_v17 = vld [vmem:[%s922_s2] ss:$0 sm:$0xff] }
   0x8   :  { %691 = vmatprep.subr.bf16.mxu0 %v737_v2  ;;  %717 = vmatprep.subr.bf16.mxu1 %v750_v15  ;;  %v852_v22 = vld [vmem:[%s923_s3] ss:$0 sm:$0xff] }
   0xb   :  { %692 = vmatpush3.bf16.msra.mxu0 %v737_v2  ;;  %718 = vmatpush3.bf16.msra.mxu1 %v750_v15 }
   0xc   :  { %693 = vmatprep.subr.bf16.mxu0 %v738_v4 }
   0xf   :  { %694 = vmatpush3.bf16.msra.mxu0 %v738_v4 }
  0x10   :  { %695 = vmatprep.subr.bf16.mxu0 %v739_v5 }
  0x13   :  { %696 = vmatpush3.bf16.msra.mxu0 %v739_v5 }
  0x14   :  { %697 = vmatprep.subr.bf16.mxu0 %v740_v6 }
  0x17   :  { %698 = vmatpush3.bf16.msra.mxu0 %v740_v6 }
  0x1a   :  { %700 = vmatmul.mubr.msk.bf16.vlgmr.msra.gmra.mxu0 %vm135_vm0, %v742_v7 }
  0x1b   :  { %703 = vmatprep.mubr.msk.bf16.mxu0 %vm135_vm0, %v743_v8 }
  0x22   :  { %704 = vmatmul.mubr.msk.bf16.gmra.mxu0 %vm135_vm0, %v744_v9 }
  0x23   :  { %707 = vmatprep.mubr.msk.bf16.mxu0 %vm135_vm0, %v745_v10 }
  0x2a   :  { %708 = vmatmul.mubr.msk.bf16.gmra.mxu0 %vm135_vm0, %v746_v11 }
  0x2b   :  { %711 = vmatprep.mubr.msk.bf16.mxu0 %vm135_vm0, %v747_v12 }
  0x32   :  { %712 = vmatmul.mubr.msk.bf16.gmra.mxu0 %vm135_vm0, %v748_v13 }
  0xda   :  { %v701_v16 = vpop.f32.mrf.mxu0 }
  0xdb   :  { %v203_v20 = vadd.f32 %v701_v16, %v845_v17 }
  0xdc   :  { %v194_v18 = vpop.f32.mrf.mxu0 }
  0xdd   :  { %v195_v19 = vadd.f32 %v845_v17, %v194_v18  ;;  %v282_v28 = vmul.f32 %v852_v22, %v203_v20  ;;  %vm259_vm3 = vcmp.gt.f32.partialorder %v203_v20, 0.0 }
  0xde   :  { %v702_v21 = vpop.f32.mrf.mxu0 }
  0xdf   :  { %v206_v23 = vadd.f32 %v702_v21, %v845_v17  ;;  %v280_v25 = vmul.f32 %v852_v22, %v195_v19  ;;  %vm257_vm2 = vcmp.gt.f32.partialorder %v195_v19, 0.0  ;;  %v298_v36 = vsel %vm259_vm3, %v203_v20, %v282_v28  ;;  %v573_v28 = vld [vmem:[%s924_s5] ss:$0 sm:$0xff] }
  0xe0   :  { %v197_v24 = vpop.f32.mrf.mxu0 }
  0xe1   :  { %vm260_vm1 = vcmp.gt.f32.partialorder %v206_v23, 0.0  ;;  %v283_v26 = vmul.f32 %v852_v22, %v206_v23  ;;  %v198_v27 = vadd.f32 %v845_v17, %v197_v24  ;;  %v296_v34 = vsel %vm257_vm2, %v195_v19, %v280_v25 }
  0xe2   :  { %v705_v29 = vpop.f32.mrf.mxu0 }
  0xe3   :  { %v281_v30 = vmul.f32 %v852_v22, %v198_v27  ;;  %vm258_vm4 = vcmp.gt.f32.partialorder %v198_v27, 0.0  ;;  %v299_v31 = vsel %vm260_vm1, %v206_v23, %v283_v26  ;;  %v219_v37 = vadd.f32 %v705_v29, %v845_v17 }
  0xe4   :  { %v210_v32 = vpop.f32.mrf.mxu0  ;;  %v313_v40 = vpack.c.bf16 %v299_v31, %v298_v36 }
  0xe5   :  { %v211_v33 = vadd.f32 %v845_v17, %v210_v32  ;;  %v297_v35 = vsel %vm258_vm4, %v198_v27, %v281_v30  ;;  %v286_v46 = vmul.f32 %v852_v22, %v219_v37  ;;  %vm263_vm8 = vcmp.gt.f32.partialorder %v219_v37, 0.0 }
  0xe6   :  { %v706_v38 = vpop.f32.mrf.mxu0  ;;  %v312_v39 = vpack.c.bf16 %v297_v35, %v296_v34 }
  0xe7   :  { %v222_v41 = vadd.f32 %v706_v38, %v845_v17  ;;  %v284_v43 = vmul.f32 %v852_v22, %v211_v33  ;;  %vm261_vm7 = vcmp.gt.f32.partialorder %v211_v33, 0.0  ;;  %v302_v54 = vsel %vm263_vm8, %v219_v37, %v286_v46 }
  0xe8   :  { %v213_v42 = vpop.f32.mrf.mxu0  ;;  %719 = vmatprep.mubr.msk.bf16.mxu1 %vm343_vm5, %v312_v39 }
  0xe9   :  { %vm264_vm6 = vcmp.gt.f32.partialorder %v222_v41, 0.0  ;;  %v287_v44 = vmul.f32 %v852_v22, %v222_v41  ;;  %v214_v45 = vadd.f32 %v845_v17, %v213_v42  ;;  %720 = vmatmul.mubr.msk.bf16.vlgmr.msra.gmra.mxu1 %vm343_vm5, %v313_v40  ;;  %v300_v51 = vsel %vm261_vm7, %v211_v33, %v284_v43 }
  0xea   :  { %v709_v47 = vpop.f32.mrf.mxu0 }
  0xeb   :  { %vm262_vm9 = vcmp.gt.f32.partialorder %v214_v45, 0.0  ;;  %v285_v48 = vmul.f32 %v852_v22, %v214_v45  ;;  %v303_v49 = vsel %vm264_vm6, %v222_v41, %v287_v44  ;;  %v235_v56 = vadd.f32 %v709_v47, %v845_v17 }
  0xec   :  { %v226_v50 = vpop.f32.mrf.mxu0  ;;  %v315_v58 = vpack.c.bf16 %v303_v49, %v302_v54 }
  0xed   :  { %v301_v52 = vsel %vm262_vm9, %v214_v45, %v285_v48  ;;  %v227_v53 = vadd.f32 %v845_v17, %v226_v50  ;;  %v290_v0 = vmul.f32 %v852_v22, %v235_v56  ;;  %vm267_vm12 = vcmp.gt.f32.partialorder %v235_v56, 0.0 }
  0xee   :  { %v314_v55 = vpack.c.bf16 %v301_v52, %v300_v51  ;;  %v710_v57 = vpop.f32.mrf.mxu0 }
  0xef   :  { %v238_v59 = vadd.f32 %v710_v57, %v845_v17  ;;  %v288_v61 = vmul.f32 %v852_v22, %v227_v53  ;;  %vm265_vm11 = vcmp.gt.f32.partialorder %v227_v53, 0.0  ;;  %v306_v8 = vsel %vm267_vm12, %v235_v56, %v290_v0 }
  0xf0   :  { %v229_v60 = vpop.f32.mrf.mxu0  ;;  %723 = vmatprep.mubr.msk.bf16.mxu1 %vm343_vm5, %v314_v55 }
  0xf1   :  { %vm268_vm10 = vcmp.gt.f32.partialorder %v238_v59, 0.0  ;;  %v291_v62 = vmul.f32 %v852_v22, %v238_v59  ;;  %v230_v63 = vadd.f32 %v845_v17, %v229_v60  ;;  %724 = vmatmul.mubr.msk.bf16.gmra.mxu1 %vm343_vm5, %v315_v58  ;;  %v304_v5 = vsel %vm265_vm11, %v227_v53, %v288_v61 }
  0xf2   :  { %v713_v1 = vpop.f32.mrf.mxu0 }
  0xf3   :  { %vm266_vm13 = vcmp.gt.f32.partialorder %v230_v63, 0.0  ;;  %v289_v2 = vmul.f32 %v852_v22, %v230_v63  ;;  %v307_v3 = vsel %vm268_vm10, %v238_v59, %v291_v62  ;;  %v251_v10 = vadd.f32 %v713_v1, %v845_v17 }
  0xf4   :  { %v242_v4 = vpop.f32.mrf.mxu0  ;;  %v317_v12 = vpack.c.bf16 %v307_v3, %v306_v8 }
  0xf5   :  { %v305_v6 = vsel %vm266_vm13, %v230_v63, %v289_v2  ;;  %v243_v7 = vadd.f32 %v845_v17, %v242_v4  ;;  %v294_v19 = vmul.f32 %v852_v22, %v251_v10  ;;  %vm271_vm0 = vcmp.gt.f32.partialorder %v251_v10, 0.0 }
  0xf6   :  { %v316_v9 = vpack.c.bf16 %v305_v6, %v304_v5  ;;  %v714_v11 = vpop.f32.mrf.mxu0 }
  0xf7   :  { %v254_v13 = vadd.f32 %v714_v11, %v845_v17  ;;  %v292_v15 = vmul.f32 %v852_v22, %v243_v7  ;;  %vm269_vm15 = vcmp.gt.f32.partialorder %v243_v7, 0.0  ;;  %v310_v25 = vsel %vm271_vm0, %v251_v10, %v294_v19 }
  0xf8   :  { %v245_v14 = vpop.f32.mrf.mxu0  ;;  %727 = vmatprep.mubr.msk.bf16.mxu1 %vm343_vm5, %v316_v9 }
  0xf9   :  { %vm272_vm14 = vcmp.gt.f32.partialorder %v254_v13, 0.0  ;;  %v295_v16 = vmul.f32 %v852_v22, %v254_v13  ;;  %v246_v18 = vadd.f32 %v845_v17, %v245_v14  ;;  %728 = vmatmul.mubr.msk.bf16.gmra.mxu1 %vm343_vm5, %v317_v12  ;;  %v308_v23 = vsel %vm269_vm15, %v243_v7, %v292_v15 }
  0xfb   :  { %vm270_vm1 = vcmp.gt.f32.partialorder %v246_v18, 0.0  ;;  %v293_v20 = vmul.f32 %v852_v22, %v246_v18  ;;  %v311_v21 = vsel %vm272_vm14, %v254_v13, %v295_v16 }
  0xfc   :  { %v319_v27 = vpack.c.bf16 %v311_v21, %v310_v25 }
  0xfd   :  { %v309_v24 = vsel %vm270_vm1, %v246_v18, %v293_v20 }
  0xfe   :  { %v318_v26 = vpack.c.bf16 %v309_v24, %v308_v23 }
 0x100   :  { %731 = vmatprep.mubr.msk.bf16.mxu1 %vm343_vm5, %v318_v26 }
 0x101   :  { %732 = vmatmul.mubr.msk.bf16.gmra.mxu1 %vm343_vm5, %v319_v27 }
 0x1a9   :  { %v721_v17 = vpop.f32.mrf.mxu1 }
 0x1aa   :  { %v411_v31 = vadd.f32 %v721_v17, %v573_v28 }
 0x1ab   :  { %v402_v29 = vpop.f32.mrf.mxu1 }
 0x1ac   :  { %v403_v33 = vadd.f32 %v573_v28, %v402_v29 }
 0x1ad   :  { %v722_v30 = vpop.f32.mrf.mxu1 }
 0x1ae   :  { %v414_v32 = vadd.f32 %v722_v30, %v573_v28 }
 0x1af   :  { %v405_v22 = vpop.f32.mrf.mxu1 }
 0x1b0   :  { %v624_v34 = vpack.c.bf16 %v414_v32, %v411_v31  ;;  %v406_v35 = vadd.f32 %v573_v28, %v405_v22 }
 0x1b1   :  { %v725_v36 = vpop.f32.mrf.mxu1 }
 0x1b2   :  { %656 = vst [vmem:[%s925_s6 + $0x8] sm:$0xff] %v624_v34   ;;  %v619_v37 = vpack.c.bf16 %v406_v35, %v403_v33  ;;  %v427_v40 = vadd.f32 %v725_v36, %v573_v28 }
 0x1b3   :  { %v418_v38 = vpop.f32.mrf.mxu1 }
 0x1b4   :  { %620 = vst [vmem:[%s925_s6] sm:$0xff] %v619_v37   ;;  %v419_v43 = vadd.f32 %v573_v28, %v418_v38 }
 0x1b5   :  { %v726_v39 = vpop.f32.mrf.mxu1 }
 0x1b6   :  { %v430_v41 = vadd.f32 %v726_v39, %v573_v28 }
 0x1b7   :  { %v421_v42 = vpop.f32.mrf.mxu1 }
 0x1b8   :  { %v634_v44 = vpack.c.bf16 %v430_v41, %v427_v40  ;;  %v422_v45 = vadd.f32 %v573_v28, %v421_v42 }
 0x1b9   :  { %v729_v46 = vpop.f32.mrf.mxu1 }
 0x1ba   :  { %658 = vst [vmem:[%s925_s6 + $0x18] sm:$0xff] %v634_v44   ;;  %v629_v47 = vpack.c.bf16 %v422_v45, %v419_v43  ;;  %v443_v50 = vadd.f32 %v729_v46, %v573_v28 }
 0x1bb   :  { %v434_v48 = vpop.f32.mrf.mxu1 }
 0x1bc   :  { %657 = vst [vmem:[%s925_s6 + $0x10] sm:$0xff] %v629_v47   ;;  %v435_v53 = vadd.f32 %v573_v28, %v434_v48 }
 0x1bd   :  { %v730_v49 = vpop.f32.mrf.mxu1 }
 0x1be   :  { %v446_v51 = vadd.f32 %v730_v49, %v573_v28 }
 0x1bf   :  { %v437_v52 = vpop.f32.mrf.mxu1 }
 0x1c0   :  { %v644_v54 = vpack.c.bf16 %v446_v51, %v443_v50  ;;  %v438_v55 = vadd.f32 %v573_v28, %v437_v52 }
 0x1c1   :  { %v733_v56 = vpop.f32.mrf.mxu1 }
 0x1c2   :  { %660 = vst [vmem:[%s925_s6 + $0x28] sm:$0xff] %v644_v54   ;;  %v639_v57 = vpack.c.bf16 %v438_v55, %v435_v53  ;;  %v459_v60 = vadd.f32 %v733_v56, %v573_v28 }
 0x1c3   :  { %v450_v58 = vpop.f32.mrf.mxu1 }
 0x1c4   :  { %659 = vst [vmem:[%s925_s6 + $0x20] sm:$0xff] %v639_v57   ;;  %v451_v63 = vadd.f32 %v573_v28, %v450_v58 }
 0x1c5   :  { %v734_v59 = vpop.f32.mrf.mxu1 }
 0x1c6   :  { %v462_v61 = vadd.f32 %v734_v59, %v573_v28 }
 0x1c7   :  { %v453_v62 = vpop.f32.mrf.mxu1 }
 0x1c8   :  { %v654_v0 = vpack.c.bf16 %v462_v61, %v459_v60  ;;  %v454_v1 = vadd.f32 %v573_v28, %v453_v62 }
 0x1ca   :  { %662 = vst [vmem:[%s925_s6 + $0x38] sm:$0xff] %v654_v0   ;;  %v649_v2 = vpack.c.bf16 %v454_v1, %v451_v63 }
 0x1cc   :  { %661 = vst [vmem:[%s925_s6 + $0x30] sm:$0xff] %v649_v2  }

// kernel: ricbe_bottleneck_forward.6
= control target key start
LH: loop header
LB: loop body
LE: loop exit
PB: predicated region body
PF: predicated region fallthrough
CT: control target
= control target key end

     0   :  { %vm16_vm0 = vcmask 261120   ;;  %v617_v0 = vmov 0.0   ;;  %s664_s17 = smov 0   ;;  %s740_s0 = inlined_call_operand.vmem [shape: bf16[16,8,128], index: 0, kind: input, shape index: {}]   ;;  %s741_s1 = inlined_call_operand.vmem [shape: bf16[32,128], index: 1, kind: input, shape index: {}]   ;;  %s742_s2 = inlined_call_operand.vmem [shape: bf16[16,8,32], index: 2, kind: output, shape index: {}]  }
   0x1   :  { %17 = vst.msk [vmem:[#allocation2] sm:$0xff] %vm16_vm0, %v617_v0  ;;  %18 = vst.msk [vmem:[#allocation3] sm:$0xff] %vm16_vm0, %v617_v0  ;;  %v643_v1 = vld [vmem:[%s741_s1] sm:$0xf]  ;;  %v648_v2 = vld [vmem:[%s741_s1 + $0x4] sm:$0xf] }
   0x2   :  { %v653_v3 = vld [vmem:[%s741_s1 + $0x8] sm:$0xf]  ;;  %v658_v4 = vld [vmem:[%s741_s1 + $0xc] sm:$0xf] }
   0x8   :  { %v23_v5 = vld [vmem:[#allocation2] sm:$0xff]   ;;  %v24_v6 = vld [vmem:[#allocation3] sm:$0xff]  }
   0x9 LB: > { %v447_v7 = vcombine.low %v653_v3, %v658_v4  ;;  %v618_v8 = vmov 0.0   ;;  %vm619_vm1 = vmmov 0   ;;  %v446_v9 = vcombine.low %v643_v1, %v648_v2  ;;  %s475_s1 = sshll.u32 %s615_s17, 4  ;;  %s620_s21 = smov 64   ;;  %s615_s17 = sphi %s664_s17, %s30_s17   ;;  %v611_v5 = vphi %v23_v5, %v744_v5   ;;  %v607_v6 = vphi %v24_v6, %v743_v6  }
   0xa   : > { %499 = vmatprep.subr.bf16.mxu0 %v618_v8  ;;  %503 = vmatprep.mubr.msk.bf16.mxu0 %vm619_vm1, %v618_v8  ;;  %v38_v10 = vpack.c.bf16 %v611_v5, %v611_v5  ;;  %s685_s20 = scalar_lea.vmem %s740_s0, %s475_s1  ;;  %s621_s22 = smov 32   ;;  %vm133_vm2 = vcmask 257024  }
   0xb   : > { %500 = vmatpush3.bf16.msra.mxu0 %v447_v7  ;;  %507 = vmatprep.subr.bf16.mxu1 %v618_v8  ;;  %v36_v11 = vld [vmem:[%s685_s20] sm:$0xff]   ;;  %v461_v57 = vld [vmem:[%s685_s20 + $0x8] sm:$0xff]   ;;  %s132_s25 = scalar_lea.vmem %s742_s2, %s475_s1  ;;  %s622_s26 = smov 96  }
   0xc   : > { %501 = vmatprep.subr.bf16.mxu0 %v618_v8  ;;  %508 = vmatpush3.bf16.msra.mxu1 %v447_v7  ;;  %v37_v12 = vunpack.c.l.bf16 %v36_v11  ;;  %v139_v35 = vunpack.c.h.bf16 %v36_v11  ;;  %v224_v58 = vunpack.c.l.bf16 %v461_v57  ;;  %s30_s17 = sadd.s32 1, %s615_s17  }
   0xd   : > { %509 = vmatprep.subr.bf16.mxu1 %v618_v8  ;;  %511 = vmatprep.mubr.msk.bf16.mxu1 %vm619_vm1, %v618_v8  ;;  %p27_p0 = scmp.ge.s32.totalorder %s30_s17, 4  }
   0xf   : > { %502 = vmatpush3.bf16.msra.mxu0 %v446_v9 }
  0x10   : > { %510 = vmatpush3.bf16.msra.mxu1 %v446_v9  ;;  %515 = vmatprep.subr.bf16.mxu0 %v618_v8 }
  0x11   : > { %523 = vmatprep.subr.bf16.mxu1 %v618_v8 }
  0x12   : > { %504 = vmatmul.mubr.msk.bf16.vlgmr.msra.gmra.mxu0 %vm16_vm0, %v38_v10 }
  0x13   : > { %516 = vmatpush3.bf16.msra.mxu0 %v447_v7  ;;  %519 = vmatprep.mubr.msk.bf16.mxu0 %vm619_vm1, %v618_v8 }
  0x14   : > { %517 = vmatprep.subr.bf16.mxu0 %v618_v8 }
  0x17   : > { %518 = vmatpush3.bf16.msra.mxu0 %v446_v9 }
  0xd2   : > { %v89_v13 = vpop.f32.mrf.mxu0 }
  0xd3   : > { %v95_v14 = vadd.f32 %v89_v13, %v37_v12 }
  0xd4   : > { %v505_v15 = vpop.f32.mrf.mxu0 }
  0xd5   : > { %561 = vtanh.f32 %v95_v14  ;;  %v96_v19 = vsub.f32 0.0, %v95_v14 }
  0xd6   : > { %v92_v16 = vpop.f32.mrf.mxu0 }
  0xd7   : > { %v97_v20 = vmul.f32 1.442695, %v96_v19 }
  0xd8   : > { %v506_v17 = vpop.f32.mrf.mxu0 }
  0xd9   : > { %563 = vpow2.f32 %v97_v20  ;;  %v309_v20 = vunpack.c.h.bf16 %v461_v57 }
  0xe2   : > { %v562_v18 = vpop.eup %561 }
  0xe3   : > { %109 = vrot.lane.b32.xlu0 %v562_v18, %s620_s21 }
  0xe6   : > { %v564_v21 = vpop.eup %563 }
  0xe7   : > { %104 = vrot.lane.b32.xlu0 %v607_v6, %s621_s22  ;;  %v99_v22 = vadd.f32 1.0, %v564_v21 }
  0xe9   : > { %565 = vrcp.f32 %v99_v22 }
  0xf6   : > { %v566_v23 = vpop.eup %565 }
 0x155   : > { %v110_v24 = vpop.permute.xlu0 %109 }
 0x156   : > { %v112_v25 = vmul.f32 %v566_v23, %v110_v24 }
 0x158   : > { %114 = vrot.lane.b32.xlu1 %v112_v25, %s621_s22 }
 0x159   : > { %v105_v26 = vpop.permute.xlu0 %104 }
 0x15a   : > { %v107_v27 = vmul.f32 %v566_v23, %v105_v26 }
 0x1ca   : > { %v115_v28 = vpop.permute.xlu1 %114 }
 0x1cb   : > { %v117_v29 = vadd.f32 %v115_v28, %v107_v27 }
 0x1cd   : > { %567 = vtanh.f32 %v117_v29 }
 0x1da   : > { %v568_v30 = vpop.eup %567 }
 0x1db   : > { %120 = vrot.lane.b32.xlu1 %v568_v30, %s620_s21 }
 0x24d   : > { %v121_v31 = vpop.permute.xlu1 %120 }
 0x24e   : > { %v123_v32 = vmul.f32 %v566_v23, %v121_v31 }
 0x250   : > { %v692_v33 = vpack.c.bf16 %v123_v32, %v123_v32 }
 0x252   : > { %140 = vrot.lane.b32.xlu0 %v692_v33, %s621_s22 }
 0x2c4   : > { %v141_v34 = vpop.permute.xlu0 %140 }
 0x2c5   : > { %512 = vmatmul.mubr.msk.bf16.vlgmr.msra.gmra.mxu1 %vm16_vm0, %v141_v34 }
 0x2c6   : > { %524 = vmatpush3.bf16.msra.mxu1 %v447_v7  ;;  %527 = vmatprep.mubr.msk.bf16.mxu1 %vm619_vm1, %v618_v8 }
 0x2c7   : > { %525 = vmatprep.subr.bf16.mxu1 %v618_v8 }
 0x2ca   : > { %526 = vmatpush3.bf16.msra.mxu1 %v446_v9 }
 0x385   : > { %v179_v36 = vpop.f32.mrf.mxu1 }
 0x386   : > { %v185_v37 = vadd.f32 %v179_v36, %v139_v35 }
 0x387   : > { %v513_v38 = vpop.f32.mrf.mxu1 }
 0x388   : > { %569 = vtanh.f32 %v185_v37  ;;  %v186_v42 = vsub.f32 0.0, %v185_v37 }
 0x389   : > { %v182_v39 = vpop.f32.mrf.mxu1 }
 0x38a   : > { %v187_v43 = vmul.f32 1.442695, %v186_v42 }
 0x38b   : > { %v514_v40 = vpop.f32.mrf.mxu1 }
 0x38c   : > { %571 = vpow2.f32 %v187_v43 }
 0x395   : > { %v570_v41 = vpop.eup %569 }
 0x396   : > { %195 = vrot.lane.b32.xlu1 %v570_v41, %s620_s21 }
 0x399   : > { %v572_v44 = vpop.eup %571 }
 0x39a   : > { %v189_v45 = vadd.f32 1.0, %v572_v44 }
 0x39c   : > { %573 = vrcp.f32 %v189_v45 }
 0x3a9   : > { %v574_v46 = vpop.eup %573 }
 0x3aa   : > { %v193_v49 = vmul.f32 %v574_v46, %v117_v29 }
 0x408   : > { %v196_v47 = vpop.permute.xlu1 %195 }
 0x409   : > { %v198_v48 = vmul.f32 %v574_v46, %v196_v47 }
 0x40b   : > { %200 = vrot.lane.b32.xlu0 %v198_v48, %s621_s22 }
 0x47d   : > { %v201_v50 = vpop.permute.xlu0 %200 }
 0x47e   : > { %v203_v51 = vadd.f32 %v201_v50, %v193_v49 }
 0x480   : > { %575 = vtanh.f32 %v203_v51 }
 0x48d   : > { %v576_v52 = vpop.eup %575 }
 0x48e   : > { %206 = vrot.lane.b32.xlu1 %v576_v52, %s620_s21 }
 0x500   : > { %v207_v53 = vpop.permute.xlu1 %206 }
 0x501   : > { %v209_v54 = vmul.f32 %v574_v46, %v207_v53 }
 0x503   : > { %v701_v55 = vpack.c.bf16 %v209_v54, %v209_v54 }
 0x505   : > { %225 = vrot.lane.b32.xlu0 %v701_v55, %s621_s22 }
 0x577   : > { %v226_v56 = vpop.permute.xlu0 %225 }
 0x578   : > { %520 = vmatmul.mubr.msk.bf16.vlgmr.msra.gmra.mxu0 %vm16_vm0, %v226_v56 }
 0x638   : > { %v264_v59 = vpop.f32.mrf.mxu0 }
 0x639   : > { %v270_v60 = vadd.f32 %v264_v59, %v224_v58 }
 0x63a   : > { %v521_v61 = vpop.f32.mrf.mxu0 }
 0x63b   : > { %577 = vtanh.f32 %v270_v60  ;;  %v271_v5 = vsub.f32 0.0, %v270_v60 }
 0x63c   : > { %v267_v62 = vpop.f32.mrf.mxu0 }
 0x63d   : > { %v272_v6 = vmul.f32 1.442695, %v271_v5 }
 0x63e   : > { %v522_v63 = vpop.f32.mrf.mxu0 }
 0x63f   : > { %579 = vpow2.f32 %v272_v6 }
 0x648   : > { %v578_v0 = vpop.eup %577 }
 0x649   : > { %280 = vrot.lane.b32.xlu1 %v578_v0, %s620_s21 }
 0x64c   : > { %v580_v7 = vpop.eup %579 }
 0x64d   : > { %v274_v8 = vadd.f32 1.0, %v580_v7 }
 0x64f   : > { %581 = vrcp.f32 %v274_v8 }
 0x65c   : > { %v582_v9 = vpop.eup %581 }
 0x65d   : > { %v278_v12 = vmul.f32 %v582_v9, %v203_v51 }
 0x6bb   : > { %v281_v10 = vpop.permute.xlu1 %280 }
 0x6bc   : > { %v283_v11 = vmul.f32 %v582_v9, %v281_v10 }
 0x6be   : > { %285 = vrot.lane.b32.xlu0 %v283_v11, %s621_s22 }
 0x730   : > { %v286_v13 = vpop.permute.xlu0 %285 }
 0x731   : > { %v288_v14 = vadd.f32 %v286_v13, %v278_v12 }
 0x733   : > { %583 = vtanh.f32 %v288_v14 }
 0x740   : > { %v584_v15 = vpop.eup %583 }
 0x741   : > { %291 = vrot.lane.b32.xlu1 %v584_v15, %s620_s21 }
 0x7b3   : > { %v292_v16 = vpop.permute.xlu1 %291 }
 0x7b4   : > { %v294_v17 = vmul.f32 %v582_v9, %v292_v16 }
 0x7b6   : > { %v295_v18 = vpack.c.bf16 %v294_v17, %v294_v17 }
 0x7b8   : > { %310 = vrot.lane.b32.xlu0 %v295_v18, %s621_s22 }
 0x82a   : > { %v311_v19 = vpop.permute.xlu0 %310 }
 0x82b   : > { %528 = vmatmul.mubr.msk.bf16.vlgmr.msra.gmra.mxu1 %vm16_vm0, %v311_v19 }
 0x8eb   : > { %v349_v21 = vpop.f32.mrf.mxu1 }
 0x8ec   : > { %v355_v22 = vadd.f32 %v349_v21, %v309_v20 }
 0x8ed   : > { %v529_v23 = vpop.f32.mrf.mxu1 }
 0x8ee   : > { %585 = vtanh.f32 %v355_v22  ;;  %v356_v27 = vsub.f32 0.0, %v355_v22 }
 0x8ef   : > { %v352_v24 = vpop.f32.mrf.mxu1 }
 0x8f0   : > { %v357_v28 = vmul.f32 1.442695, %v356_v27 }
 0x8f1   : > { %v530_v25 = vpop.f32.mrf.mxu1 }
 0x8f2   : > { %587 = vpow2.f32 %v357_v28 }
 0x8fb   : > { %v586_v26 = vpop.eup %585 }
 0x8fc   : > { %365 = vrot.lane.b32.xlu1 %v586_v26, %s620_s21 }
 0x8ff   : > { %v588_v29 = vpop.eup %587 }
 0x900   : > { %v359_v30 = vadd.f32 1.0, %v588_v29 }
 0x902   : > { %589 = vrcp.f32 %v359_v30 }
 0x90f   : > { %v590_v31 = vpop.eup %589 }
 0x910   : > { %v363_v35 = vmul.f32 %v590_v31, %v288_v14 }
 0x96e   : > { %v366_v32 = vpop.permute.xlu1 %365 }
 0x96f   : > { %v368_v34 = vmul.f32 %v590_v31, %v366_v32 }
 0x971   : > { %370 = vrot.lane.b32.xlu0 %v368_v34, %s621_s22 }
 0x975   : > { %128 = vrot.lane.b32.xlu0 %v692_v33, %s621_s22 }
 0x979   : > { %299 = vrot.lane.b32.xlu0 %v295_v18, %s621_s22 }
 0x9e3   : > { %v371_v36 = vpop.permute.xlu0 %370 }
 0x9e4   : > { %v373_v37 = vadd.f32 %v371_v36, %v363_v35 }
 0x9e6   : > { %591 = vtanh.f32 %v373_v37 }
 0x9e7   : > { %v129_v38 = vpop.permute.xlu0 %128 }
 0x9e8   : > { %134 = vst.msk [vmem:[%s132_s25] sm:$0xf] %vm133_vm2, %v129_v38 }
 0x9eb   : > { %v300_v39 = vpop.permute.xlu0 %299 }
 0x9ec   : > { %466 = vst.msk [vmem:[%s132_s25 + $0x8] sm:$0xf] %vm133_vm2, %v300_v39 }
 0x9f3   : > { %v592_v40 = vpop.eup %591 }
 0x9f4   : > { %376 = vrot.lane.b32.xlu1 %v592_v40, %s620_s21 }
 0x9f8   : > { %214 = vrot.lane.b32.xlu1 %v701_v55, %s621_s22 }
 0xa66   : > { %v377_v33 = vpop.permute.xlu1 %376 }
 0xa67   : > { %v379_v41 = vmul.f32 %v590_v31, %v377_v33 }
 0xa69   : > { %v485_v42 = vpack.c.bf16 %v379_v41, %v379_v41  ;;  %391 = vrot.lane.b32.xlu0 %v379_v41, %s621_s22 }
 0xa6a   : > { %v215_v43 = vpop.permute.xlu1 %214 }
 0xa6b   : > { %458 = vst.msk [vmem:[%s132_s25 + $0x4] sm:$0xf] %vm133_vm2, %v215_v43  ;;  %384 = vrot.lane.b32.xlu1 %v485_v42, %s621_s22 }
 0xa6f   : > { %395 = vrot.lane.b32.xlu1 %v373_v37, %s622_s26 }
 0xadb   : > { %v392_v44 = vpop.permute.xlu0 %391  }
 0xadc   : > { %v744_v5 = vmov %v392_v44  ;;  %399 = vst.msk [vmem:[#allocation2] sm:$0xff] (%p27_p0), %vm16_vm0, %v392_v44 }
 0xadd   : > { %v385_v45 = vpop.permute.xlu1 %384 }
 0xade   : > { %474 = vst.msk [vmem:[%s132_s25 + $0xc] sm:$0xf] %vm133_vm2, %v385_v45  ;;  %29 = sbr.rel (!%p27_p0) target bundleno = 9 (0x9), region = 47 }
 0xae1   : > { %v396_v46 = vpop.permute.xlu1 %395  }
 0xae2   : > { %v743_v6 = vmov %v396_v46  ;;  %400 = vst.msk [vmem:[#allocation3] sm:$0xff] (%p27_p0), %vm16_vm0, %v396_v46 }

</bundles_post_ra>
